<compile_context>
chip_gen: v7x
topology: tpu7x:2x2x1
jax: 0.10.0
libtpu: 0.0.40
codegen_flags: <defaults>
</compile_context>

<pallas_src>
import functools

import jax
import jax.numpy as jnp
import numpy as np
from jax.experimental import pallas as pl
from jax.experimental.pallas import tpu as pltpu


def _round_up(x, m):
    return (x + m - 1) // m * m


def lstm_kernel(
    x_ref,      # (T*Bp, I)   time-major, batch-padded input, flattened over (T, B)
    wx0_ref,    # (I,  G)     layer-0 input weights, gates packed [i|f|g|o]
    wh0_ref,    # (H,  G)     layer-0 recurrent weights
    b0_ref,     # (1,  G)     folded layer-0 bias (b_ih + b_hh)
    wx1_ref,    # (H,  G)     layer-1 input weights
    wh1_ref,    # (H,  G)     layer-1 recurrent weights
    b1_ref,     # (1,  G)     folded layer-1 bias
    wfc_ref,    # (H,  Op)    FC head weight (lane-dense output)
    bfc_ref,    # (1,  Op)
    out_ref,    # (Bp, Op)
    *,
    seq_len,
    batch_pad,
    hidden,
):
    bp = batch_pad
    h = hidden
    g_dim = b0_ref.shape[-1]

    # Prologue: layer-0 input projection for ALL timesteps in one MXU pass,
    # bias folded in. This work is off the serial recurrence chain.
    x_proj = (
        jnp.dot(x_ref[...], wx0_ref[...], preferred_element_type=jnp.float32)
        + b0_ref[...]
    )  # (T*Bp, G)

    # Hoist the layer-1 bias broadcast once (JAX does not CSE broadcast_in_dim).
    b1 = jnp.broadcast_to(b1_ref[...], (bp, g_dim))

    h1 = jnp.zeros((bp, h), jnp.float32)
    c1 = jnp.zeros((bp, h), jnp.float32)
    h2 = jnp.zeros((bp, h), jnp.float32)
    c2 = jnp.zeros((bp, h), jnp.float32)

    def apply_gates(gates, c_prev):
        # One sigmoid + one tanh over the whole packed-gate vreg (2 EUP pushes),
        # then static lane slices in PyTorch gate order i, f, g, o.
        sig = jax.nn.sigmoid(gates)
        th = jnp.tanh(gates)
        i_g = sig[:, 0 * h:1 * h]
        f_g = sig[:, 1 * h:2 * h]
        g_g = th[:, 2 * h:3 * h]
        o_g = sig[:, 3 * h:4 * h]
        c_new = f_g * c_prev + i_g * g_g
        h_new = o_g * jnp.tanh(c_new)
        return h_new, c_new

    # Fully unrolled recurrence (T is small and static); h/c carried as values.
    for t in range(seq_len):
        # Layer 0: precomputed input projection + one compact recurrent matmul.
        g0 = x_proj[t * bp:(t + 1) * bp, :] + jnp.dot(
            h1, wh0_ref[...], preferred_element_type=jnp.float32)
        h1, c1 = apply_gates(g0, c1)
        # Layer 1: two independent compact dots (no concat); inter-layer
        # dropout is identity at inference.
        g1 = (
            jnp.dot(h1, wx1_ref[...], preferred_element_type=jnp.float32)
            + jnp.dot(h2, wh1_ref[...], preferred_element_type=jnp.float32)
            + b1
        )
        h2, c2 = apply_gates(g1, c2)

    # Dropout (identity at inference) + FC head; lane-dense store.
    out_ref[...] = (
        jnp.dot(h2, wfc_ref[...], preferred_element_type=jnp.float32)
        + bfc_ref[...]
    )


def prepare_params(params, *, input_size, hidden, output_size):
    """One-time packing of PyTorch-layout weights into the kernel's compact,
    gate-packed layout. Call once at init, NOT per forward call."""
    h = hidden
    g_dim = _round_up(4 * h, 128)
    op = _round_up(output_size, 128)
    f32 = jnp.float32

    def pack_w(w, k):
        # (4H, k) PyTorch layout -> (k, G) transposed, gates contiguous [i|f|g|o].
        return jnp.zeros((k, g_dim), f32).at[:, :4 * h].set(jnp.asarray(w, f32).T)

    def pack_b(b):
        return jnp.zeros((1, g_dim), f32).at[0, :4 * h].set(jnp.asarray(b, f32))

    return {
        "wx0": pack_w(params["w_ih_l0"], input_size),
        "wh0": pack_w(params["w_hh_l0"], h),
        "b0": pack_b(params["b_ih_l0"] + params["b_hh_l0"]),
        "wx1": pack_w(params["w_ih_l1"], h),
        "wh1": pack_w(params["w_hh_l1"], h),
        "b1": pack_b(params["b_ih_l1"] + params["b_hh_l1"]),
        "wfc": jnp.zeros((h, op), f32).at[:, :output_size].set(
            jnp.asarray(params["w_fc"], f32).T),
        "bfc": jnp.zeros((1, op), f32).at[0, :output_size].set(
            jnp.asarray(params["b_fc"], f32)),
    }


def lstm_model_forward(x, prepared, *, hidden, output_size):
    """x: (B, T, I) float32 (batch_first, like PyTorch). Returns (B, output_size)."""
    B, T, I = x.shape
    bp = max(_round_up(B, 8), 8)          # sublane tile
    op = prepared["bfc"].shape[-1]

    # Time-major, batch-padded, flattened over (T, B): (T*Bp, I).
    x_pad = jnp.zeros((T, bp, I), jnp.float32).at[:, :B, :].set(
        jnp.transpose(x, (1, 0, 2)))
    x_2d = x_pad.reshape(T * bp, I)

    vmem = pl.BlockSpec(memory_space=pltpu.MemorySpace.VMEM)
    out_pad = pl.pallas_call(
        functools.partial(lstm_kernel, seq_len=T, batch_pad=bp, hidden=hidden),
        out_shape=jax.ShapeDtypeStruct((bp, op), jnp.float32),
        in_specs=[vmem] * 9,
        out_specs=vmem,
    )(x_2d, prepared["wx0"], prepared["wh0"], prepared["b0"],
      prepared["wx1"], prepared["wh1"], prepared["b1"],
      prepared["wfc"], prepared["bfc"])

    return out_pad[:B, :output_size]


def lstm_model_reference(x, params, *, hidden, output_size):
    """Pure-JAX reference for correctness checking (PyTorch-layout weights)."""
    B, T, I = x.shape
    H = hidden

    def cell(x_t, h, c, w_ih, w_hh, b_ih, b_hh):
        gates = x_t @ w_ih.T + h @ w_hh.T + b_ih + b_hh
        i = jax.nn.sigmoid(gates[:, 0 * H:1 * H])
        f = jax.nn.sigmoid(gates[:, 1 * H:2 * H])
        g = jnp.tanh(gates[:, 2 * H:3 * H])
        o = jax.nn.sigmoid(gates[:, 3 * H:4 * H])
        c = f * c + i * g
        h = o * jnp.tanh(c)
        return h, c

    h1 = jnp.zeros((B, H), jnp.float32)
    c1 = jnp.zeros((B, H), jnp.float32)
    h2 = jnp.zeros((B, H), jnp.float32)
    c2 = jnp.zeros((B, H), jnp.float32)
    for t in range(T):
        x_t = x[:, t, :]
        h1, c1 = cell(x_t, h1, c1, params["w_ih_l0"], params["w_hh_l0"],
                      params["b_ih_l0"], params["b_hh_l0"])
        h2, c2 = cell(h1, h2, c2, params["w_ih_l1"], params["w_hh_l1"],
                      params["b_ih_l1"], params["b_hh_l1"])
    return h2 @ params["w_fc"].T + params["b_fc"]


def init_params(key, input_size, hidden, output_size):
    """Deterministic init mirroring PyTorch shapes (uniform(-1/sqrt(H), 1/sqrt(H)))."""
    H = hidden
    k = 1.0 / np.sqrt(H)
    names_shapes = [
        ("w_ih_l0", (4 * H, input_size)),
        ("w_hh_l0", (4 * H, H)),
        ("b_ih_l0", (4 * H,)),
        ("b_hh_l0", (4 * H,)),
        ("w_ih_l1", (4 * H, H)),
        ("w_hh_l1", (4 * H, H)),
        ("b_ih_l1", (4 * H,)),
        ("b_hh_l1", (4 * H,)),
        ("w_fc", (output_size, H)),
        ("b_fc", (output_size,)),
    ]
    params = {}
    keys = jax.random.split(key, len(names_shapes))
    for (name, shape), kk in zip(names_shapes, keys):
        params[name] = jax.random.uniform(kk, shape, jnp.float32, -k, k)
    return params


if __name__ == "__main__":
    B, T = 2, 8
    INPUT_SIZE = 16
    HIDDEN = 32
    OUTPUT_SIZE = 8

    key = jax.random.PRNGKey(0)
    kx, kp = jax.random.split(key)
    x = jax.random.normal(kx, (B, T, INPUT_SIZE), jnp.float32)
    params = init_params(kp, INPUT_SIZE, HIDDEN, OUTPUT_SIZE)

    # One-time weight packing (hoisted out of the per-call path).
    prepared = prepare_params(params, input_size=INPUT_SIZE, hidden=HIDDEN,
                              output_size=OUTPUT_SIZE)
    prepared = jax.tree_util.tree_map(jax.block_until_ready, prepared)

    out = lstm_model_forward(x, prepared, hidden=HIDDEN, output_size=OUTPUT_SIZE)
    out = jax.block_until_ready(out)

    ref = lstm_model_reference(x, params, hidden=HIDDEN, output_size=OUTPUT_SIZE)
    np.testing.assert_allclose(np.asarray(out), np.asarray(ref), rtol=1e-4, atol=1e-4)

    print("KERNEL_OK")
</pallas_src>

<mosaic_0001>
module attributes {stable_mosaic.version = 11 : i64} {
  func.func @lstm_kernel(%arg0: memref<64x16xf32, #tpu.memory_space<vmem>>, %arg1: memref<16x128xf32, #tpu.memory_space<vmem>>, %arg2: memref<32x128xf32, #tpu.memory_space<vmem>>, %arg3: memref<1x128xf32, #tpu.memory_space<vmem>>, %arg4: memref<32x128xf32, #tpu.memory_space<vmem>>, %arg5: memref<32x128xf32, #tpu.memory_space<vmem>>, %arg6: memref<1x128xf32, #tpu.memory_space<vmem>>, %arg7: memref<32x128xf32, #tpu.memory_space<vmem>>, %arg8: memref<1x128xf32, #tpu.memory_space<vmem>>, %arg9: memref<8x128xf32, #tpu.memory_space<vmem>>) attributes {dimension_semantics = [], scalar_prefetch = 0 : i64, scratch_operands = 0 : i64, tpu.core_type = #tpu.core_type<tc>} {
    %c0 = arith.constant 0 : index
    %c0_0 = arith.constant 0 : index
    %0 = vector.load %arg0[%c0, %c0_0] : memref<64x16xf32, #tpu.memory_space<vmem>>, vector<64x16xf32>
    %c0_1 = arith.constant 0 : index
    %c0_2 = arith.constant 0 : index
    %1 = vector.load %arg1[%c0_1, %c0_2] : memref<16x128xf32, #tpu.memory_space<vmem>>, vector<16x128xf32>
    %cst = arith.constant dense<0.000000e+00> : vector<64x128xf32>
    %2 = tpu.matmul %0, %1, %cst {dimension_numbers = #tpu.dot_dimension_numbers<[1], [0], [0], [1], [0, 0, 1, 1], [], []>} : vector<64x16xf32>, vector<16x128xf32>, vector<64x128xf32> -> vector<64x128xf32>
    %c0_3 = arith.constant 0 : index
    %c0_4 = arith.constant 0 : index
    %3 = vector.load %arg3[%c0_3, %c0_4] : memref<1x128xf32, #tpu.memory_space<vmem>>, vector<1x128xf32>
    %4 = vector.broadcast %3 : vector<1x128xf32> to vector<64x128xf32>
    %5 = arith.addf %2, %4 : vector<64x128xf32>
    %c0_5 = arith.constant 0 : index
    %c0_6 = arith.constant 0 : index
    %6 = vector.load %arg6[%c0_5, %c0_6] : memref<1x128xf32, #tpu.memory_space<vmem>>, vector<1x128xf32>
    %7 = vector.shape_cast %6 : vector<1x128xf32> to vector<1x128xf32>
    %8 = vector.broadcast %7 : vector<1x128xf32> to vector<8x128xf32>
    %cst_7 = arith.constant 0.000000e+00 : f32
    %9 = vector.broadcast %cst_7 : f32 to vector<8x32xf32>
    %cst_8 = arith.constant 0.000000e+00 : f32
    %10 = vector.broadcast %cst_8 : f32 to vector<8x32xf32>
    %cst_9 = arith.constant 0.000000e+00 : f32
    %11 = vector.broadcast %cst_9 : f32 to vector<8x32xf32>
    %cst_10 = arith.constant 0.000000e+00 : f32
    %12 = vector.broadcast %cst_10 : f32 to vector<8x32xf32>
    %13 = vector.extract_strided_slice %5 {offsets = [0, 0], sizes = [8, 128], strides = [1, 1]} : vector<64x128xf32> to vector<8x128xf32>
    %c0_11 = arith.constant 0 : index
    %c0_12 = arith.constant 0 : index
    %14 = vector.load %arg2[%c0_11, %c0_12] : memref<32x128xf32, #tpu.memory_space<vmem>>, vector<32x128xf32>
    %cst_13 = arith.constant dense<0.000000e+00> : vector<8x128xf32>
    %15 = tpu.matmul %9, %14, %cst_13 {dimension_numbers = #tpu.dot_dimension_numbers<[1], [0], [0], [1], [0, 0, 1, 1], [], []>} : vector<8x32xf32>, vector<32x128xf32>, vector<8x128xf32> -> vector<8x128xf32>
    %16 = arith.addf %13, %15 : vector<8x128xf32>
    %17 = arith.negf %16 : vector<8x128xf32>
    %18 = math.exp %17 : vector<8x128xf32>
    %cst_14 = arith.constant 1.000000e+00 : f32
    %19 = vector.broadcast %cst_14 : f32 to vector<8x128xf32>
    %20 = arith.addf %19, %18 : vector<8x128xf32>
    %21 = arith.divf %19, %20 : vector<8x128xf32>
    %22 = math.tanh %16 : vector<8x128xf32>
    %23 = vector.extract_strided_slice %21 {offsets = [0, 0], sizes = [8, 32], strides = [1, 1]} : vector<8x128xf32> to vector<8x32xf32>
    %24 = vector.extract_strided_slice %21 {offsets = [0, 32], sizes = [8, 32], strides = [1, 1]} : vector<8x128xf32> to vector<8x32xf32>
    %25 = vector.extract_strided_slice %22 {offsets = [0, 64], sizes = [8, 32], strides = [1, 1]} : vector<8x128xf32> to vector<8x32xf32>
    %26 = vector.extract_strided_slice %21 {offsets = [0, 96], sizes = [8, 32], strides = [1, 1]} : vector<8x128xf32> to vector<8x32xf32>
    %27 = arith.mulf %24, %10 : vector<8x32xf32>
    %28 = arith.mulf %23, %25 : vector<8x32xf32>
    %29 = arith.addf %27, %28 : vector<8x32xf32>
    %30 = math.tanh %29 : vector<8x32xf32>
    %31 = arith.mulf %26, %30 : vector<8x32xf32>
    %c0_15 = arith.constant 0 : index
    %c0_16 = arith.constant 0 : index
    %32 = vector.load %arg4[%c0_15, %c0_16] : memref<32x128xf32, #tpu.memory_space<vmem>>, vector<32x128xf32>
    %cst_17 = arith.constant dense<0.000000e+00> : vector<8x128xf32>
    %33 = tpu.matmul %31, %32, %cst_17 {dimension_numbers = #tpu.dot_dimension_numbers<[1], [0], [0], [1], [0, 0, 1, 1], [], []>} : vector<8x32xf32>, vector<32x128xf32>, vector<8x128xf32> -> vector<8x128xf32>
    %c0_18 = arith.constant 0 : index
    %c0_19 = arith.constant 0 : index
    %34 = vector.load %arg5[%c0_18, %c0_19] : memref<32x128xf32, #tpu.memory_space<vmem>>, vector<32x128xf32>
    %cst_20 = arith.constant dense<0.000000e+00> : vector<8x128xf32>
    %35 = tpu.matmul %11, %34, %cst_20 {dimension_numbers = #tpu.dot_dimension_numbers<[1], [0], [0], [1], [0, 0, 1, 1], [], []>} : vector<8x32xf32>, vector<32x128xf32>, vector<8x128xf32> -> vector<8x128xf32>
    %36 = arith.addf %33, %35 : vector<8x128xf32>
    %37 = arith.addf %36, %8 : vector<8x128xf32>
    %38 = arith.negf %37 : vector<8x128xf32>
    %39 = math.exp %38 : vector<8x128xf32>
    %cst_21 = arith.constant 1.000000e+00 : f32
    %40 = vector.broadcast %cst_21 : f32 to vector<8x128xf32>
    %41 = arith.addf %40, %39 : vector<8x128xf32>
    %42 = arith.divf %40, %41 : vector<8x128xf32>
    %43 = math.tanh %37 : vector<8x128xf32>
    %44 = vector.extract_strided_slice %42 {offsets = [0, 0], sizes = [8, 32], strides = [1, 1]} : vector<8x128xf32> to vector<8x32xf32>
    %45 = vector.extract_strided_slice %42 {offsets = [0, 32], sizes = [8, 32], strides = [1, 1]} : vector<8x128xf32> to vector<8x32xf32>
    %46 = vector.extract_strided_slice %43 {offsets = [0, 64], sizes = [8, 32], strides = [1, 1]} : vector<8x128xf32> to vector<8x32xf32>
    %47 = vector.extract_strided_slice %42 {offsets = [0, 96], sizes = [8, 32], strides = [1, 1]} : vector<8x128xf32> to vector<8x32xf32>
    %48 = arith.mulf %45, %12 : vector<8x32xf32>
    %49 = arith.mulf %44, %46 : vector<8x32xf32>
    %50 = arith.addf %48, %49 : vector<8x32xf32>
    %51 = math.tanh %50 : vector<8x32xf32>
    %52 = arith.mulf %47, %51 : vector<8x32xf32>
    %53 = vector.extract_strided_slice %5 {offsets = [8, 0], sizes = [8, 128], strides = [1, 1]} : vector<64x128xf32> to vector<8x128xf32>
    %c0_22 = arith.constant 0 : index
    %c0_23 = arith.constant 0 : index
    %54 = vector.load %arg2[%c0_22, %c0_23] : memref<32x128xf32, #tpu.memory_space<vmem>>, vector<32x128xf32>
    %cst_24 = arith.constant dense<0.000000e+00> : vector<8x128xf32>
    %55 = tpu.matmul %31, %54, %cst_24 {dimension_numbers = #tpu.dot_dimension_numbers<[1], [0], [0], [1], [0, 0, 1, 1], [], []>} : vector<8x32xf32>, vector<32x128xf32>, vector<8x128xf32> -> vector<8x128xf32>
    %56 = arith.addf %53, %55 : vector<8x128xf32>
    %57 = arith.negf %56 : vector<8x128xf32>
    %58 = math.exp %57 : vector<8x128xf32>
    %cst_25 = arith.constant 1.000000e+00 : f32
    %59 = vector.broadcast %cst_25 : f32 to vector<8x128xf32>
    %60 = arith.addf %59, %58 : vector<8x128xf32>
    %61 = arith.divf %59, %60 : vector<8x128xf32>
    %62 = math.tanh %56 : vector<8x128xf32>
    %63 = vector.extract_strided_slice %61 {offsets = [0, 0], sizes = [8, 32], strides = [1, 1]} : vector<8x128xf32> to vector<8x32xf32>
    %64 = vector.extract_strided_slice %61 {offsets = [0, 32], sizes = [8, 32], strides = [1, 1]} : vector<8x128xf32> to vector<8x32xf32>
    %65 = vector.extract_strided_slice %62 {offsets = [0, 64], sizes = [8, 32], strides = [1, 1]} : vector<8x128xf32> to vector<8x32xf32>
    %66 = vector.extract_strided_slice %61 {offsets = [0, 96], sizes = [8, 32], strides = [1, 1]} : vector<8x128xf32> to vector<8x32xf32>
    %67 = arith.mulf %64, %29 : vector<8x32xf32>
    %68 = arith.mulf %63, %65 : vector<8x32xf32>
    %69 = arith.addf %67, %68 : vector<8x32xf32>
    %70 = math.tanh %69 : vector<8x32xf32>
    %71 = arith.mulf %66, %70 : vector<8x32xf32>
    %c0_26 = arith.constant 0 : index
    %c0_27 = arith.constant 0 : index
    %72 = vector.load %arg4[%c0_26, %c0_27] : memref<32x128xf32, #tpu.memory_space<vmem>>, vector<32x128xf32>
    %cst_28 = arith.constant dense<0.000000e+00> : vector<8x128xf32>
    %73 = tpu.matmul %71, %72, %cst_28 {dimension_numbers = #tpu.dot_dimension_numbers<[1], [0], [0], [1], [0, 0, 1, 1], [], []>} : vector<8x32xf32>, vector<32x128xf32>, vector<8x128xf32> -> vector<8x128xf32>
    %c0_29 = arith.constant 0 : index
    %c0_30 = arith.constant 0 : index
    %74 = vector.load %arg5[%c0_29, %c0_30] : memref<32x128xf32, #tpu.memory_space<vmem>>, vector<32x128xf32>
    %cst_31 = arith.constant dense<0.000000e+00> : vector<8x128xf32>
    %75 = tpu.matmul %52, %74, %cst_31 {dimension_numbers = #tpu.dot_dimension_numbers<[1], [0], [0], [1], [0, 0, 1, 1], [], []>} : vector<8x32xf32>, vector<32x128xf32>, vector<8x128xf32> -> vector<8x128xf32>
    %76 = arith.addf %73, %75 : vector<8x128xf32>
    %77 = arith.addf %76, %8 : vector<8x128xf32>
    %78 = arith.negf %77 : vector<8x128xf32>
    %79 = math.exp %78 : vector<8x128xf32>
    %cst_32 = arith.constant 1.000000e+00 : f32
    %80 = vector.broadcast %cst_32 : f32 to vector<8x128xf32>
    %81 = arith.addf %80, %79 : vector<8x128xf32>
    %82 = arith.divf %80, %81 : vector<8x128xf32>
    %83 = math.tanh %77 : vector<8x128xf32>
    %84 = vector.extract_strided_slice %82 {offsets = [0, 0], sizes = [8, 32], strides = [1, 1]} : vector<8x128xf32> to vector<8x32xf32>
    %85 = vector.extract_strided_slice %82 {offsets = [0, 32], sizes = [8, 32], strides = [1, 1]} : vector<8x128xf32> to vector<8x32xf32>
    %86 = vector.extract_strided_slice %83 {offsets = [0, 64], sizes = [8, 32], strides = [1, 1]} : vector<8x128xf32> to vector<8x32xf32>
    %87 = vector.extract_strided_slice %82 {offsets = [0, 96], sizes = [8, 32], strides = [1, 1]} : vector<8x128xf32> to vector<8x32xf32>
    %88 = arith.mulf %85, %50 : vector<8x32xf32>
    %89 = arith.mulf %84, %86 : vector<8x32xf32>
    %90 = arith.addf %88, %89 : vector<8x32xf32>
    %91 = math.tanh %90 : vector<8x32xf32>
    %92 = arith.mulf %87, %91 : vector<8x32xf32>
    %93 = vector.extract_strided_slice %5 {offsets = [16, 0], sizes = [8, 128], strides = [1, 1]} : vector<64x128xf32> to vector<8x128xf32>
    %c0_33 = arith.constant 0 : index
    %c0_34 = arith.constant 0 : index
    %94 = vector.load %arg2[%c0_33, %c0_34] : memref<32x128xf32, #tpu.memory_space<vmem>>, vector<32x128xf32>
    %cst_35 = arith.constant dense<0.000000e+00> : vector<8x128xf32>
    %95 = tpu.matmul %71, %94, %cst_35 {dimension_numbers = #tpu.dot_dimension_numbers<[1], [0], [0], [1], [0, 0, 1, 1], [], []>} : vector<8x32xf32>, vector<32x128xf32>, vector<8x128xf32> -> vector<8x128xf32>
    %96 = arith.addf %93, %95 : vector<8x128xf32>
    %97 = arith.negf %96 : vector<8x128xf32>
    %98 = math.exp %97 : vector<8x128xf32>
    %cst_36 = arith.constant 1.000000e+00 : f32
    %99 = vector.broadcast %cst_36 : f32 to vector<8x128xf32>
    %100 = arith.addf %99, %98 : vector<8x128xf32>
    %101 = arith.divf %99, %100 : vector<8x128xf32>
    %102 = math.tanh %96 : vector<8x128xf32>
    %103 = vector.extract_strided_slice %101 {offsets = [0, 0], sizes = [8, 32], strides = [1, 1]} : vector<8x128xf32> to vector<8x32xf32>
    %104 = vector.extract_strided_slice %101 {offsets = [0, 32], sizes = [8, 32], strides = [1, 1]} : vector<8x128xf32> to vector<8x32xf32>
    %105 = vector.extract_strided_slice %102 {offsets = [0, 64], sizes = [8, 32], strides = [1, 1]} : vector<8x128xf32> to vector<8x32xf32>
    %106 = vector.extract_strided_slice %101 {offsets = [0, 96], sizes = [8, 32], strides = [1, 1]} : vector<8x128xf32> to vector<8x32xf32>
    %107 = arith.mulf %104, %69 : vector<8x32xf32>
    %108 = arith.mulf %103, %105 : vector<8x32xf32>
    %109 = arith.addf %107, %108 : vector<8x32xf32>
    %110 = math.tanh %109 : vector<8x32xf32>
    %111 = arith.mulf %106, %110 : vector<8x32xf32>
    %c0_37 = arith.constant 0 : index
    %c0_38 = arith.constant 0 : index
    %112 = vector.load %arg4[%c0_37, %c0_38] : memref<32x128xf32, #tpu.memory_space<vmem>>, vector<32x128xf32>
    %cst_39 = arith.constant dense<0.000000e+00> : vector<8x128xf32>
    %113 = tpu.matmul %111, %112, %cst_39 {dimension_numbers = #tpu.dot_dimension_numbers<[1], [0], [0], [1], [0, 0, 1, 1], [], []>} : vector<8x32xf32>, vector<32x128xf32>, vector<8x128xf32> -> vector<8x128xf32>
    %c0_40 = arith.constant 0 : index
    %c0_41 = arith.constant 0 : index
    %114 = vector.load %arg5[%c0_40, %c0_41] : memref<32x128xf32, #tpu.memory_space<vmem>>, vector<32x128xf32>
    %cst_42 = arith.constant dense<0.000000e+00> : vector<8x128xf32>
    %115 = tpu.matmul %92, %114, %cst_42 {dimension_numbers = #tpu.dot_dimension_numbers<[1], [0], [0], [1], [0, 0, 1, 1], [], []>} : vector<8x32xf32>, vector<32x128xf32>, vector<8x128xf32> -> vector<8x128xf32>
    %116 = arith.addf %113, %115 : vector<8x128xf32>
    %117 = arith.addf %116, %8 : vector<8x128xf32>
    %118 = arith.negf %117 : vector<8x128xf32>
    %119 = math.exp %118 : vector<8x128xf32>
    %cst_43 = arith.constant 1.000000e+00 : f32
    %120 = vector.broadcast %cst_43 : f32 to vector<8x128xf32>
    %121 = arith.addf %120, %119 : vector<8x128xf32>
    %122 = arith.divf %120, %121 : vector<8x128xf32>
    %123 = math.tanh %117 : vector<8x128xf32>
    %124 = vector.extract_strided_slice %122 {offsets = [0, 0], sizes = [8, 32], strides = [1, 1]} : vector<8x128xf32> to vector<8x32xf32>
    %125 = vector.extract_strided_slice %122 {offsets = [0, 32], sizes = [8, 32], strides = [1, 1]} : vector<8x128xf32> to vector<8x32xf32>
    %126 = vector.extract_strided_slice %123 {offsets = [0, 64], sizes = [8, 32], strides = [1, 1]} : vector<8x128xf32> to vector<8x32xf32>
    %127 = vector.extract_strided_slice %122 {offsets = [0, 96], sizes = [8, 32], strides = [1, 1]} : vector<8x128xf32> to vector<8x32xf32>
    %128 = arith.mulf %125, %90 : vector<8x32xf32>
    %129 = arith.mulf %124, %126 : vector<8x32xf32>
    %130 = arith.addf %128, %129 : vector<8x32xf32>
    %131 = math.tanh %130 : vector<8x32xf32>
    %132 = arith.mulf %127, %131 : vector<8x32xf32>
    %133 = vector.extract_strided_slice %5 {offsets = [24, 0], sizes = [8, 128], strides = [1, 1]} : vector<64x128xf32> to vector<8x128xf32>
    %c0_44 = arith.constant 0 : index
    %c0_45 = arith.constant 0 : index
    %134 = vector.load %arg2[%c0_44, %c0_45] : memref<32x128xf32, #tpu.memory_space<vmem>>, vector<32x128xf32>
    %cst_46 = arith.constant dense<0.000000e+00> : vector<8x128xf32>
    %135 = tpu.matmul %111, %134, %cst_46 {dimension_numbers = #tpu.dot_dimension_numbers<[1], [0], [0], [1], [0, 0, 1, 1], [], []>} : vector<8x32xf32>, vector<32x128xf32>, vector<8x128xf32> -> vector<8x128xf32>
    %136 = arith.addf %133, %135 : vector<8x128xf32>
    %137 = arith.negf %136 : vector<8x128xf32>
    %138 = math.exp %137 : vector<8x128xf32>
    %cst_47 = arith.constant 1.000000e+00 : f32
    %139 = vector.broadcast %cst_47 : f32 to vector<8x128xf32>
    %140 = arith.addf %139, %138 : vector<8x128xf32>
    %141 = arith.divf %139, %140 : vector<8x128xf32>
    %142 = math.tanh %136 : vector<8x128xf32>
    %143 = vector.extract_strided_slice %141 {offsets = [0, 0], sizes = [8, 32], strides = [1, 1]} : vector<8x128xf32> to vector<8x32xf32>
    %144 = vector.extract_strided_slice %141 {offsets = [0, 32], sizes = [8, 32], strides = [1, 1]} : vector<8x128xf32> to vector<8x32xf32>
    %145 = vector.extract_strided_slice %142 {offsets = [0, 64], sizes = [8, 32], strides = [1, 1]} : vector<8x128xf32> to vector<8x32xf32>
    %146 = vector.extract_strided_slice %141 {offsets = [0, 96], sizes = [8, 32], strides = [1, 1]} : vector<8x128xf32> to vector<8x32xf32>
    %147 = arith.mulf %144, %109 : vector<8x32xf32>
    %148 = arith.mulf %143, %145 : vector<8x32xf32>
    %149 = arith.addf %147, %148 : vector<8x32xf32>
    %150 = math.tanh %149 : vector<8x32xf32>
    %151 = arith.mulf %146, %150 : vector<8x32xf32>
    %c0_48 = arith.constant 0 : index
    %c0_49 = arith.constant 0 : index
    %152 = vector.load %arg4[%c0_48, %c0_49] : memref<32x128xf32, #tpu.memory_space<vmem>>, vector<32x128xf32>
    %cst_50 = arith.constant dense<0.000000e+00> : vector<8x128xf32>
    %153 = tpu.matmul %151, %152, %cst_50 {dimension_numbers = #tpu.dot_dimension_numbers<[1], [0], [0], [1], [0, 0, 1, 1], [], []>} : vector<8x32xf32>, vector<32x128xf32>, vector<8x128xf32> -> vector<8x128xf32>
    %c0_51 = arith.constant 0 : index
    %c0_52 = arith.constant 0 : index
    %154 = vector.load %arg5[%c0_51, %c0_52] : memref<32x128xf32, #tpu.memory_space<vmem>>, vector<32x128xf32>
    %cst_53 = arith.constant dense<0.000000e+00> : vector<8x128xf32>
    %155 = tpu.matmul %132, %154, %cst_53 {dimension_numbers = #tpu.dot_dimension_numbers<[1], [0], [0], [1], [0, 0, 1, 1], [], []>} : vector<8x32xf32>, vector<32x128xf32>, vector<8x128xf32> -> vector<8x128xf32>
    %156 = arith.addf %153, %155 : vector<8x128xf32>
    %157 = arith.addf %156, %8 : vector<8x128xf32>
    %158 = arith.negf %157 : vector<8x128xf32>
    %159 = math.exp %158 : vector<8x128xf32>
    %cst_54 = arith.constant 1.000000e+00 : f32
    %160 = vector.broadcast %cst_54 : f32 to vector<8x128xf32>
    %161 = arith.addf %160, %159 : vector<8x128xf32>
    %162 = arith.divf %160, %161 : vector<8x128xf32>
    %163 = math.tanh %157 : vector<8x128xf32>
    %164 = vector.extract_strided_slice %162 {offsets = [0, 0], sizes = [8, 32], strides = [1, 1]} : vector<8x128xf32> to vector<8x32xf32>
    %165 = vector.extract_strided_slice %162 {offsets = [0, 32], sizes = [8, 32], strides = [1, 1]} : vector<8x128xf32> to vector<8x32xf32>
    %166 = vector.extract_strided_slice %163 {offsets = [0, 64], sizes = [8, 32], strides = [1, 1]} : vector<8x128xf32> to vector<8x32xf32>
    %167 = vector.extract_strided_slice %162 {offsets = [0, 96], sizes = [8, 32], strides = [1, 1]} : vector<8x128xf32> to vector<8x32xf32>
    %168 = arith.mulf %165, %130 : vector<8x32xf32>
    %169 = arith.mulf %164, %166 : vector<8x32xf32>
    %170 = arith.addf %168, %169 : vector<8x32xf32>
    %171 = math.tanh %170 : vector<8x32xf32>
    %172 = arith.mulf %167, %171 : vector<8x32xf32>
    %173 = vector.extract_strided_slice %5 {offsets = [32, 0], sizes = [8, 128], strides = [1, 1]} : vector<64x128xf32> to vector<8x128xf32>
    %c0_55 = arith.constant 0 : index
    %c0_56 = arith.constant 0 : index
    %174 = vector.load %arg2[%c0_55, %c0_56] : memref<32x128xf32, #tpu.memory_space<vmem>>, vector<32x128xf32>
    %cst_57 = arith.constant dense<0.000000e+00> : vector<8x128xf32>
    %175 = tpu.matmul %151, %174, %cst_57 {dimension_numbers = #tpu.dot_dimension_numbers<[1], [0], [0], [1], [0, 0, 1, 1], [], []>} : vector<8x32xf32>, vector<32x128xf32>, vector<8x128xf32> -> vector<8x128xf32>
    %176 = arith.addf %173, %175 : vector<8x128xf32>
    %177 = arith.negf %176 : vector<8x128xf32>
    %178 = math.exp %177 : vector<8x128xf32>
    %cst_58 = arith.constant 1.000000e+00 : f32
    %179 = vector.broadcast %cst_58 : f32 to vector<8x128xf32>
    %180 = arith.addf %179, %178 : vector<8x128xf32>
    %181 = arith.divf %179, %180 : vector<8x128xf32>
    %182 = math.tanh %176 : vector<8x128xf32>
    %183 = vector.extract_strided_slice %181 {offsets = [0, 0], sizes = [8, 32], strides = [1, 1]} : vector<8x128xf32> to vector<8x32xf32>
    %184 = vector.extract_strided_slice %181 {offsets = [0, 32], sizes = [8, 32], strides = [1, 1]} : vector<8x128xf32> to vector<8x32xf32>
    %185 = vector.extract_strided_slice %182 {offsets = [0, 64], sizes = [8, 32], strides = [1, 1]} : vector<8x128xf32> to vector<8x32xf32>
    %186 = vector.extract_strided_slice %181 {offsets = [0, 96], sizes = [8, 32], strides = [1, 1]} : vector<8x128xf32> to vector<8x32xf32>
    %187 = arith.mulf %184, %149 : vector<8x32xf32>
    %188 = arith.mulf %183, %185 : vector<8x32xf32>
    %189 = arith.addf %187, %188 : vector<8x32xf32>
    %190 = math.tanh %189 : vector<8x32xf32>
    %191 = arith.mulf %186, %190 : vector<8x32xf32>
    %c0_59 = arith.constant 0 : index
    %c0_60 = arith.constant 0 : index
    %192 = vector.load %arg4[%c0_59, %c0_60] : memref<32x128xf32, #tpu.memory_space<vmem>>, vector<32x128xf32>
    %cst_61 = arith.constant dense<0.000000e+00> : vector<8x128xf32>
    %193 = tpu.matmul %191, %192, %cst_61 {dimension_numbers = #tpu.dot_dimension_numbers<[1], [0], [0], [1], [0, 0, 1, 1], [], []>} : vector<8x32xf32>, vector<32x128xf32>, vector<8x128xf32> -> vector<8x128xf32>
    %c0_62 = arith.constant 0 : index
    %c0_63 = arith.constant 0 : index
    %194 = vector.load %arg5[%c0_62, %c0_63] : memref<32x128xf32, #tpu.memory_space<vmem>>, vector<32x128xf32>
    %cst_64 = arith.constant dense<0.000000e+00> : vector<8x128xf32>
    %195 = tpu.matmul %172, %194, %cst_64 {dimension_numbers = #tpu.dot_dimension_numbers<[1], [0], [0], [1], [0, 0, 1, 1], [], []>} : vector<8x32xf32>, vector<32x128xf32>, vector<8x128xf32> -> vector<8x128xf32>
    %196 = arith.addf %193, %195 : vector<8x128xf32>
    %197 = arith.addf %196, %8 : vector<8x128xf32>
    %198 = arith.negf %197 : vector<8x128xf32>
    %199 = math.exp %198 : vector<8x128xf32>
    %cst_65 = arith.constant 1.000000e+00 : f32
    %200 = vector.broadcast %cst_65 : f32 to vector<8x128xf32>
    %201 = arith.addf %200, %199 : vector<8x128xf32>
    %202 = arith.divf %200, %201 : vector<8x128xf32>
    %203 = math.tanh %197 : vector<8x128xf32>
    %204 = vector.extract_strided_slice %202 {offsets = [0, 0], sizes = [8, 32], strides = [1, 1]} : vector<8x128xf32> to vector<8x32xf32>
    %205 = vector.extract_strided_slice %202 {offsets = [0, 32], sizes = [8, 32], strides = [1, 1]} : vector<8x128xf32> to vector<8x32xf32>
    %206 = vector.extract_strided_slice %203 {offsets = [0, 64], sizes = [8, 32], strides = [1, 1]} : vector<8x128xf32> to vector<8x32xf32>
    %207 = vector.extract_strided_slice %202 {offsets = [0, 96], sizes = [8, 32], strides = [1, 1]} : vector<8x128xf32> to vector<8x32xf32>
    %208 = arith.mulf %205, %170 : vector<8x32xf32>
    %209 = arith.mulf %204, %206 : vector<8x32xf32>
    %210 = arith.addf %208, %209 : vector<8x32xf32>
    %211 = math.tanh %210 : vector<8x32xf32>
    %212 = arith.mulf %207, %211 : vector<8x32xf32>
    %213 = vector.extract_strided_slice %5 {offsets = [40, 0], sizes = [8, 128], strides = [1, 1]} : vector<64x128xf32> to vector<8x128xf32>
    %c0_66 = arith.constant 0 : index
    %c0_67 = arith.constant 0 : index
    %214 = vector.load %arg2[%c0_66, %c0_67] : memref<32x128xf32, #tpu.memory_space<vmem>>, vector<32x128xf32>
    %cst_68 = arith.constant dense<0.000000e+00> : vector<8x128xf32>
    %215 = tpu.matmul %191, %214, %cst_68 {dimension_numbers = #tpu.dot_dimension_numbers<[1], [0], [0], [1], [0, 0, 1, 1], [], []>} : vector<8x32xf32>, vector<32x128xf32>, vector<8x128xf32> -> vector<8x128xf32>
    %216 = arith.addf %213, %215 : vector<8x128xf32>
    %217 = arith.negf %216 : vector<8x128xf32>
    %218 = math.exp %217 : vector<8x128xf32>
    %cst_69 = arith.constant 1.000000e+00 : f32
    %219 = vector.broadcast %cst_69 : f32 to vector<8x128xf32>
    %220 = arith.addf %219, %218 : vector<8x128xf32>
    %221 = arith.divf %219, %220 : vector<8x128xf32>
    %222 = math.tanh %216 : vector<8x128xf32>
    %223 = vector.extract_strided_slice %221 {offsets = [0, 0], sizes = [8, 32], strides = [1, 1]} : vector<8x128xf32> to vector<8x32xf32>
    %224 = vector.extract_strided_slice %221 {offsets = [0, 32], sizes = [8, 32], strides = [1, 1]} : vector<8x128xf32> to vector<8x32xf32>
    %225 = vector.extract_strided_slice %222 {offsets = [0, 64], sizes = [8, 32], strides = [1, 1]} : vector<8x128xf32> to vector<8x32xf32>
    %226 = vector.extract_strided_slice %221 {offsets = [0, 96], sizes = [8, 32], strides = [1, 1]} : vector<8x128xf32> to vector<8x32xf32>
    %227 = arith.mulf %224, %189 : vector<8x32xf32>
    %228 = arith.mulf %223, %225 : vector<8x32xf32>
    %229 = arith.addf %227, %228 : vector<8x32xf32>
    %230 = math.tanh %229 : vector<8x32xf32>
    %231 = arith.mulf %226, %230 : vector<8x32xf32>
    %c0_70 = arith.constant 0 : index
    %c0_71 = arith.constant 0 : index
    %232 = vector.load %arg4[%c0_70, %c0_71] : memref<32x128xf32, #tpu.memory_space<vmem>>, vector<32x128xf32>
    %cst_72 = arith.constant dense<0.000000e+00> : vector<8x128xf32>
    %233 = tpu.matmul %231, %232, %cst_72 {dimension_numbers = #tpu.dot_dimension_numbers<[1], [0], [0], [1], [0, 0, 1, 1], [], []>} : vector<8x32xf32>, vector<32x128xf32>, vector<8x128xf32> -> vector<8x128xf32>
    %c0_73 = arith.constant 0 : index
    %c0_74 = arith.constant 0 : index
    %234 = vector.load %arg5[%c0_73, %c0_74] : memref<32x128xf32, #tpu.memory_space<vmem>>, vector<32x128xf32>
    %cst_75 = arith.constant dense<0.000000e+00> : vector<8x128xf32>
    %235 = tpu.matmul %212, %234, %cst_75 {dimension_numbers = #tpu.dot_dimension_numbers<[1], [0], [0], [1], [0, 0, 1, 1], [], []>} : vector<8x32xf32>, vector<32x128xf32>, vector<8x128xf32> -> vector<8x128xf32>
    %236 = arith.addf %233, %235 : vector<8x128xf32>
    %237 = arith.addf %236, %8 : vector<8x128xf32>
    %238 = arith.negf %237 : vector<8x128xf32>
    %239 = math.exp %238 : vector<8x128xf32>
    %cst_76 = arith.constant 1.000000e+00 : f32
    %240 = vector.broadcast %cst_76 : f32 to vector<8x128xf32>
    %241 = arith.addf %240, %239 : vector<8x128xf32>
    %242 = arith.divf %240, %241 : vector<8x128xf32>
    %243 = math.tanh %237 : vector<8x128xf32>
    %244 = vector.extract_strided_slice %242 {offsets = [0, 0], sizes = [8, 32], strides = [1, 1]} : vector<8x128xf32> to vector<8x32xf32>
    %245 = vector.extract_strided_slice %242 {offsets = [0, 32], sizes = [8, 32], strides = [1, 1]} : vector<8x128xf32> to vector<8x32xf32>
    %246 = vector.extract_strided_slice %243 {offsets = [0, 64], sizes = [8, 32], strides = [1, 1]} : vector<8x128xf32> to vector<8x32xf32>
    %247 = vector.extract_strided_slice %242 {offsets = [0, 96], sizes = [8, 32], strides = [1, 1]} : vector<8x128xf32> to vector<8x32xf32>
    %248 = arith.mulf %245, %210 : vector<8x32xf32>
    %249 = arith.mulf %244, %246 : vector<8x32xf32>
    %250 = arith.addf %248, %249 : vector<8x32xf32>
    %251 = math.tanh %250 : vector<8x32xf32>
    %252 = arith.mulf %247, %251 : vector<8x32xf32>
    %253 = vector.extract_strided_slice %5 {offsets = [48, 0], sizes = [8, 128], strides = [1, 1]} : vector<64x128xf32> to vector<8x128xf32>
    %c0_77 = arith.constant 0 : index
    %c0_78 = arith.constant 0 : index
    %254 = vector.load %arg2[%c0_77, %c0_78] : memref<32x128xf32, #tpu.memory_space<vmem>>, vector<32x128xf32>
    %cst_79 = arith.constant dense<0.000000e+00> : vector<8x128xf32>
    %255 = tpu.matmul %231, %254, %cst_79 {dimension_numbers = #tpu.dot_dimension_numbers<[1], [0], [0], [1], [0, 0, 1, 1], [], []>} : vector<8x32xf32>, vector<32x128xf32>, vector<8x128xf32> -> vector<8x128xf32>
    %256 = arith.addf %253, %255 : vector<8x128xf32>
    %257 = arith.negf %256 : vector<8x128xf32>
    %258 = math.exp %257 : vector<8x128xf32>
    %cst_80 = arith.constant 1.000000e+00 : f32
    %259 = vector.broadcast %cst_80 : f32 to vector<8x128xf32>
    %260 = arith.addf %259, %258 : vector<8x128xf32>
    %261 = arith.divf %259, %260 : vector<8x128xf32>
    %262 = math.tanh %256 : vector<8x128xf32>
    %263 = vector.extract_strided_slice %261 {offsets = [0, 0], sizes = [8, 32], strides = [1, 1]} : vector<8x128xf32> to vector<8x32xf32>
    %264 = vector.extract_strided_slice %261 {offsets = [0, 32], sizes = [8, 32], strides = [1, 1]} : vector<8x128xf32> to vector<8x32xf32>
    %265 = vector.extract_strided_slice %262 {offsets = [0, 64], sizes = [8, 32], strides = [1, 1]} : vector<8x128xf32> to vector<8x32xf32>
    %266 = vector.extract_strided_slice %261 {offsets = [0, 96], sizes = [8, 32], strides = [1, 1]} : vector<8x128xf32> to vector<8x32xf32>
    %267 = arith.mulf %264, %229 : vector<8x32xf32>
    %268 = arith.mulf %263, %265 : vector<8x32xf32>
    %269 = arith.addf %267, %268 : vector<8x32xf32>
    %270 = math.tanh %269 : vector<8x32xf32>
    %271 = arith.mulf %266, %270 : vector<8x32xf32>
    %c0_81 = arith.constant 0 : index
    %c0_82 = arith.constant 0 : index
    %272 = vector.load %arg4[%c0_81, %c0_82] : memref<32x128xf32, #tpu.memory_space<vmem>>, vector<32x128xf32>
    %cst_83 = arith.constant dense<0.000000e+00> : vector<8x128xf32>
    %273 = tpu.matmul %271, %272, %cst_83 {dimension_numbers = #tpu.dot_dimension_numbers<[1], [0], [0], [1], [0, 0, 1, 1], [], []>} : vector<8x32xf32>, vector<32x128xf32>, vector<8x128xf32> -> vector<8x128xf32>
    %c0_84 = arith.constant 0 : index
    %c0_85 = arith.constant 0 : index
    %274 = vector.load %arg5[%c0_84, %c0_85] : memref<32x128xf32, #tpu.memory_space<vmem>>, vector<32x128xf32>
    %cst_86 = arith.constant dense<0.000000e+00> : vector<8x128xf32>
    %275 = tpu.matmul %252, %274, %cst_86 {dimension_numbers = #tpu.dot_dimension_numbers<[1], [0], [0], [1], [0, 0, 1, 1], [], []>} : vector<8x32xf32>, vector<32x128xf32>, vector<8x128xf32> -> vector<8x128xf32>
    %276 = arith.addf %273, %275 : vector<8x128xf32>
    %277 = arith.addf %276, %8 : vector<8x128xf32>
    %278 = arith.negf %277 : vector<8x128xf32>
    %279 = math.exp %278 : vector<8x128xf32>
    %cst_87 = arith.constant 1.000000e+00 : f32
    %280 = vector.broadcast %cst_87 : f32 to vector<8x128xf32>
    %281 = arith.addf %280, %279 : vector<8x128xf32>
    %282 = arith.divf %280, %281 : vector<8x128xf32>
    %283 = math.tanh %277 : vector<8x128xf32>
    %284 = vector.extract_strided_slice %282 {offsets = [0, 0], sizes = [8, 32], strides = [1, 1]} : vector<8x128xf32> to vector<8x32xf32>
    %285 = vector.extract_strided_slice %282 {offsets = [0, 32], sizes = [8, 32], strides = [1, 1]} : vector<8x128xf32> to vector<8x32xf32>
    %286 = vector.extract_strided_slice %283 {offsets = [0, 64], sizes = [8, 32], strides = [1, 1]} : vector<8x128xf32> to vector<8x32xf32>
    %287 = vector.extract_strided_slice %282 {offsets = [0, 96], sizes = [8, 32], strides = [1, 1]} : vector<8x128xf32> to vector<8x32xf32>
    %288 = arith.mulf %285, %250 : vector<8x32xf32>
    %289 = arith.mulf %284, %286 : vector<8x32xf32>
    %290 = arith.addf %288, %289 : vector<8x32xf32>
    %291 = math.tanh %290 : vector<8x32xf32>
    %292 = arith.mulf %287, %291 : vector<8x32xf32>
    %293 = vector.extract_strided_slice %5 {offsets = [56, 0], sizes = [8, 128], strides = [1, 1]} : vector<64x128xf32> to vector<8x128xf32>
    %c0_88 = arith.constant 0 : index
    %c0_89 = arith.constant 0 : index
    %294 = vector.load %arg2[%c0_88, %c0_89] : memref<32x128xf32, #tpu.memory_space<vmem>>, vector<32x128xf32>
    %cst_90 = arith.constant dense<0.000000e+00> : vector<8x128xf32>
    %295 = tpu.matmul %271, %294, %cst_90 {dimension_numbers = #tpu.dot_dimension_numbers<[1], [0], [0], [1], [0, 0, 1, 1], [], []>} : vector<8x32xf32>, vector<32x128xf32>, vector<8x128xf32> -> vector<8x128xf32>
    %296 = arith.addf %293, %295 : vector<8x128xf32>
    %297 = arith.negf %296 : vector<8x128xf32>
    %298 = math.exp %297 : vector<8x128xf32>
    %cst_91 = arith.constant 1.000000e+00 : f32
    %299 = vector.broadcast %cst_91 : f32 to vector<8x128xf32>
    %300 = arith.addf %299, %298 : vector<8x128xf32>
    %301 = arith.divf %299, %300 : vector<8x128xf32>
    %302 = math.tanh %296 : vector<8x128xf32>
    %303 = vector.extract_strided_slice %301 {offsets = [0, 0], sizes = [8, 32], strides = [1, 1]} : vector<8x128xf32> to vector<8x32xf32>
    %304 = vector.extract_strided_slice %301 {offsets = [0, 32], sizes = [8, 32], strides = [1, 1]} : vector<8x128xf32> to vector<8x32xf32>
    %305 = vector.extract_strided_slice %302 {offsets = [0, 64], sizes = [8, 32], strides = [1, 1]} : vector<8x128xf32> to vector<8x32xf32>
    %306 = vector.extract_strided_slice %301 {offsets = [0, 96], sizes = [8, 32], strides = [1, 1]} : vector<8x128xf32> to vector<8x32xf32>
    %307 = arith.mulf %304, %269 : vector<8x32xf32>
    %308 = arith.mulf %303, %305 : vector<8x32xf32>
    %309 = arith.addf %307, %308 : vector<8x32xf32>
    %310 = math.tanh %309 : vector<8x32xf32>
    %311 = arith.mulf %306, %310 : vector<8x32xf32>
    %c0_92 = arith.constant 0 : index
    %c0_93 = arith.constant 0 : index
    %312 = vector.load %arg4[%c0_92, %c0_93] : memref<32x128xf32, #tpu.memory_space<vmem>>, vector<32x128xf32>
    %cst_94 = arith.constant dense<0.000000e+00> : vector<8x128xf32>
    %313 = tpu.matmul %311, %312, %cst_94 {dimension_numbers = #tpu.dot_dimension_numbers<[1], [0], [0], [1], [0, 0, 1, 1], [], []>} : vector<8x32xf32>, vector<32x128xf32>, vector<8x128xf32> -> vector<8x128xf32>
    %c0_95 = arith.constant 0 : index
    %c0_96 = arith.constant 0 : index
    %314 = vector.load %arg5[%c0_95, %c0_96] : memref<32x128xf32, #tpu.memory_space<vmem>>, vector<32x128xf32>
    %cst_97 = arith.constant dense<0.000000e+00> : vector<8x128xf32>
    %315 = tpu.matmul %292, %314, %cst_97 {dimension_numbers = #tpu.dot_dimension_numbers<[1], [0], [0], [1], [0, 0, 1, 1], [], []>} : vector<8x32xf32>, vector<32x128xf32>, vector<8x128xf32> -> vector<8x128xf32>
    %316 = arith.addf %313, %315 : vector<8x128xf32>
    %317 = arith.addf %316, %8 : vector<8x128xf32>
    %318 = arith.negf %317 : vector<8x128xf32>
    %319 = math.exp %318 : vector<8x128xf32>
    %cst_98 = arith.constant 1.000000e+00 : f32
    %320 = vector.broadcast %cst_98 : f32 to vector<8x128xf32>
    %321 = arith.addf %320, %319 : vector<8x128xf32>
    %322 = arith.divf %320, %321 : vector<8x128xf32>
    %323 = math.tanh %317 : vector<8x128xf32>
    %324 = vector.extract_strided_slice %322 {offsets = [0, 0], sizes = [8, 32], strides = [1, 1]} : vector<8x128xf32> to vector<8x32xf32>
    %325 = vector.extract_strided_slice %322 {offsets = [0, 32], sizes = [8, 32], strides = [1, 1]} : vector<8x128xf32> to vector<8x32xf32>
    %326 = vector.extract_strided_slice %323 {offsets = [0, 64], sizes = [8, 32], strides = [1, 1]} : vector<8x128xf32> to vector<8x32xf32>
    %327 = vector.extract_strided_slice %322 {offsets = [0, 96], sizes = [8, 32], strides = [1, 1]} : vector<8x128xf32> to vector<8x32xf32>
    %328 = arith.mulf %325, %290 : vector<8x32xf32>
    %329 = arith.mulf %324, %326 : vector<8x32xf32>
    %330 = arith.addf %328, %329 : vector<8x32xf32>
    %331 = math.tanh %330 : vector<8x32xf32>
    %332 = arith.mulf %327, %331 : vector<8x32xf32>
    %c0_99 = arith.constant 0 : index
    %c0_100 = arith.constant 0 : index
    %333 = vector.load %arg7[%c0_99, %c0_100] : memref<32x128xf32, #tpu.memory_space<vmem>>, vector<32x128xf32>
    %cst_101 = arith.constant dense<0.000000e+00> : vector<8x128xf32>
    %334 = tpu.matmul %332, %333, %cst_101 {dimension_numbers = #tpu.dot_dimension_numbers<[1], [0], [0], [1], [0, 0, 1, 1], [], []>} : vector<8x32xf32>, vector<32x128xf32>, vector<8x128xf32> -> vector<8x128xf32>
    %c0_102 = arith.constant 0 : index
    %c0_103 = arith.constant 0 : index
    %335 = vector.load %arg8[%c0_102, %c0_103] : memref<1x128xf32, #tpu.memory_space<vmem>>, vector<1x128xf32>
    %336 = vector.broadcast %335 : vector<1x128xf32> to vector<8x128xf32>
    %337 = arith.addf %334, %336 : vector<8x128xf32>
    %c0_104 = arith.constant 0 : index
    %c0_105 = arith.constant 0 : index
    %338 = vector.load %arg9[%c0_104, %c0_105] : memref<8x128xf32, #tpu.memory_space<vmem>>, vector<8x128xf32>
    tpu.vector_store %arg9[%c0_104, %c0_105], %337 {strides = array<i32>} : memref<8x128xf32, #tpu.memory_space<vmem>>, vector<8x128xf32>,
    return
  }
}

</mosaic_0001>

<bundles_post_ra>
// kernel: tpu_custom_call.1
= control target key start
LH: loop header
LB: loop body
LE: loop exit
PB: predicated region body
PF: predicated region fallthrough
CT: control target
= control target key end

     0   :  { %14 = vsyncpa [#allocation3], 0  ;;  %s3847_s0 = inlined_call_operand.vmem [shape: f32[64,16], index: 0, kind: input, shape index: {}]   ;;  %s3848_s1 = inlined_call_operand.hbm [shape: f32[16,128], index: 1, kind: input, shape index: {}]   ;;  %s3849_s2 = inlined_call_operand.vmem [shape: f32[32,128], index: 2, kind: input, shape index: {}]   ;;  %s3850_s3 = inlined_call_operand.vmem [shape: f32[1,128], index: 3, kind: input, shape index: {}]   ;;  %s3851_s4 = inlined_call_operand.vmem [shape: f32[32,128], index: 4, kind: input, shape index: {}]   ;;  %s3852_s5 = inlined_call_operand.vmem [shape: f32[32,128], index: 5, kind: input, shape index: {}]   ;;  %s3853_s6 = inlined_call_operand.vmem [shape: f32[1,128], index: 6, kind: input, shape index: {}]   ;;  %s3854_s7 = inlined_call_operand.hbm [shape: f32[32,128], index: 7, kind: input, shape index: {}]   ;;  %s3855_s8 = inlined_call_operand.vmem [shape: f32[1,128], index: 8, kind: input, shape index: {}]   ;;  %s3856_s9 = inlined_call_operand.hbm [shape: f32[8,128], index: 9, kind: output, shape index: {}]  }
   0x1   :  { %15 = vsyncpa [#allocation6], 0 }
   0x2   :  { %16 = vsyncpa [#allocation4], 0  ;;  %s3330_s30 = smov [#allocation2]   ;;  %s3258_s13 = scalar_lea.hbm %s3848_s1, 256 }
   0x3   :  { %s24_s10 = sshll.u32 %s3330_s30, 4  ;;  %p3259_p0 = scmp.ne.s32.totalorder %s3848_s1, %s3258_s13  ;;  %s25_s10 = int_to_ptr.vmem [resolvable:$true] %s24_s10 }
   0x4   :  { %p3262_p1 = scmp.lt.u32.totalorder %s3258_s13, %s3848_s1 }
   0x6   :  { %p3264_p2 = pnand %p3262_p1, %p3259_p0 }
   0x8   :  { %3267 = shalt.err (!%p3264_p2)
}
   0x9   :  { %s3268_s18 = scalar_lea.vmem %s25_s10, 256  ;;  %p3273_p4 = scmp.lt.s32.totalorder %s25_s10, %s25_s10 }
   0xa   :  { %p3269_p3 = scmp.ne.s32.totalorder %s25_s10, %s3268_s18  ;;  %p3274_p5 = scmp.lt.s32.totalorder %s3268_s18, %s3268_s18 }
   0xc   :  { %p3275_p6 = por %p3274_p5, %p3273_p4 }
   0xe   :  { %p3276_p7 = pnand %p3275_p6, %p3269_p3 }
  0x10   :  { %3279 = shalt.err (!%p3276_p7)
}
  0x11   :  { %s3331_s19 = smov 128   ;;  %s3332_s20 = smov 8  }
  0x12   :  { %30 = dma.hbm_to_vmem [thread:$0]  %s3848_s1, 256, %s25_s10, [#allocation3], %s3331_s19, %s3331_s19, %s3332_s20  }
  0x13   :  { %s3333_s23 = smov [#allocation5]   ;;  %s3280_s27 = scalar_lea.hbm %s3854_s7, 512 }
  0x14   :  { %s46_s24 = sshll.u32 %s3333_s23, 4  ;;  %p3281_p8 = scmp.ne.s32.totalorder %s3854_s7, %s3280_s27  ;;  %s47_s24 = int_to_ptr.vmem [resolvable:$true] %s46_s24 }
  0x15   :  { %p3284_p9 = scmp.lt.u32.totalorder %s3280_s27, %s3854_s7 }
  0x17   :  { %p3286_p10 = pnand %p3284_p9, %p3281_p8 }
  0x19   :  { %3289 = shalt.err (!%p3286_p10)
}
  0x1a   :  { %s3290_s12 = scalar_lea.vmem %s47_s24, 512  ;;  %p3295_p12 = scmp.lt.s32.totalorder %s47_s24, %s47_s24 }
  0x1b   :  { %p3291_p11 = scmp.ne.s32.totalorder %s47_s24, %s3290_s12  ;;  %p3296_p13 = scmp.lt.s32.totalorder %s3290_s12, %s3290_s12 }
  0x1d   :  { %p3297_p0 = por %p3296_p13, %p3295_p12 }
  0x1f   :  { %p3298_p1 = pnand %p3297_p0, %p3291_p11 }
  0x21   :  { %3301 = shalt.err (!%p3298_p1)
}
  0x22   :  { %52 = dma.hbm_to_vmem [thread:$0]  %s3854_s7, 512, %s47_s24, [#allocation6], %s3331_s19, %s3331_s19, %s3332_s20  }
  0x23   :  { %3324 = dma.done.wait [#allocation3], 256  }
  0x24   :  { %3325 = vsyncadd [#allocation3], 4294967040 }
  0x25   :  { %3326 = dma.done.wait [#allocation6], 512  }
  0x26   :  { %3327 = vsyncadd [#allocation6], 4294966784  ;;  %v3334_v0 = vmov 0.0|0.0   ;;  %vm3335_vm0 = vmmov 0   ;;  %v3336_v1 = vmov 0.0   ;;  %vm78_vm1 = vcmask 130048  }
  0x27   :  { %2969 = vmatprep.subr.bf16.mxu1 %v3334_v0  ;;  %2698 = vmatprep.mubr.msk.f32.mxu1 %vm3335_vm0, %v3336_v1  ;;  %v69_v2 = vld [vmem:[#allocation2] sm:$0xff]  ;;  %v70_v3 = vld [vmem:[#allocation2 + $0x8] sm:$0xff]  ;;  %v217_v9 = vld [vmem:[%s3849_s2 + $0x10] sm:$0xff]  ;;  %s3337_s25 = smov 64   ;;  %s3338_s26 = smov 32   ;;  %vm219_vm2 = vcmask 261120  }
  0x28   :  { %v215_v4 = vld [vmem:[%s3849_s2] sm:$0xff]  ;;  %v2965_v5 = vpack.c.bf16 %v70_v3, %v69_v2  ;;  %v216_v6 = vld [vmem:[%s3849_s2 + $0x8] sm:$0xff]  ;;  %v218_v10 = vld [vmem:[%s3849_s2 + $0x18] sm:$0xff]  ;;  %s3339_s10 = smov [#allocation7]  }
  0x29   :  { %v61_v7 = vld [vmem:[%s3847_s0] sm:$0xff]  ;;  %v3426_v8 = vpack.c.bf16 %v216_v6, %v215_v4  ;;  %v62_v11 = vld [vmem:[%s3847_s0 + $0x8] sm:$0xff]  ;;  %v3439_v12 = vpack.c.bf16 %v218_v10, %v217_v9  ;;  %v63_v35 = vld [vmem:[%s3847_s0 + $0x10] sm:$0xff]  ;;  %s2479_s13 = sshll.u32 %s3339_s10, 4  ;;  %s2480_s13 = int_to_ptr.vmem [resolvable:$true] %s2479_s13 }
  0x2a   :  { %2678 = vmatprep.mubr.msk.f32.mxu0 %vm78_vm1, %v61_v7  ;;  %2966 = vmatprep.subr.bf16.mxu0 %v2965_v5  ;;  %v3452_v13 = vld [vmem:[%s3850_s3] ss:$0 sm:$0xff]  ;;  %v319_v31 = vld [vmem:[%s3851_s4 + $0x8] sm:$0xff]  ;;  %v64_v36 = vld [vmem:[%s3847_s0 + $0x18] sm:$0xff]  ;;  %s3302_s14 = scalar_lea.vmem %s2480_s13, 128  ;;  %p3307_p3 = scmp.lt.s32.totalorder %s2480_s13, %s2480_s13 }
  0x2b   :  { %2971 = vmatpush3.bf16.msra.mxu1 %v3426_v8  ;;  %2968 = vmatpush3.bf16.msra.mxu0 %v2965_v5  ;;  %v318_v30 = vld [vmem:[%s3851_s4] sm:$0xff]  ;;  %v323_v34 = vld [vmem:[%s3852_s5 + $0x8] sm:$0xff]  ;;  %v324_v38 = vld [vmem:[%s3852_s5 + $0x10] sm:$0xff]  ;;  %p3303_p2 = scmp.ne.s32.totalorder %s2480_s13, %s3302_s14  ;;  %p3308_p4 = scmp.lt.s32.totalorder %s3302_s14, %s3302_s14 }
  0x2c   :  { %2972 = vmatprep.subr.bf16.mxu1 %v3334_v0  ;;  %2981 = vmatprep.subr.bf16.mxu0 %v3334_v0  ;;  %v322_v32 = vld [vmem:[%s3852_s5] sm:$0xff]  ;;  %v3471_v33 = vpack.c.bf16 %v319_v31, %v318_v30  ;;  %v325_v39 = vld [vmem:[%s3852_s5 + $0x18] sm:$0xff]  ;;  %v320_v41 = vld [vmem:[%s3851_s4 + $0x10] sm:$0xff] }
  0x2d   :  { %v3482_v37 = vpack.c.bf16 %v323_v34, %v322_v32  ;;  %v65_v40 = vld [vmem:[%s3847_s0 + $0x20] sm:$0xff]  ;;  %v321_v42 = vld [vmem:[%s3851_s4 + $0x18] sm:$0xff]  ;;  %v3503_v43 = vpack.c.bf16 %v325_v39, %v324_v38  ;;  %v66_v45 = vld [vmem:[%s3847_s0 + $0x28] sm:$0xff]  ;;  %p3309_p5 = por %p3308_p4, %p3307_p3 }
  0x2e   :  { %2679 = vmatmul.mubr.msk.f32.vlgmr.msra.gmra.mrb[0].mxu0 %vm78_vm1, %v62_v11  ;;  %v3505_v44 = vpack.c.bf16 %v321_v42, %v320_v41  ;;  %v67_v46 = vld [vmem:[%s3847_s0 + $0x30] sm:$0xff]  ;;  %v68_v47 = vld [vmem:[%s3847_s0 + $0x38] sm:$0xff]  ;;  %v3568_v61 = vld [vmem:[%s3853_s6] ss:$0 sm:$0xff] }
  0x2f   :  { %2974 = vmatpush3.bf16.msra.mxu1 %v3439_v12  ;;  %2681 = vmatprep.mubr.msk.f32.mxu0 %vm78_vm1, %v63_v35  ;;  %p3310_p6 = pnand %p3309_p5, %p3303_p2 }
  0x30   :  { %2975 = vmatprep.subr.bf16.mxu1 %v3334_v0  ;;  %2983 = vmatpush3.bf16.msra.mxu0 %v3471_v33 }
  0x31   :  { %2984 = vmatprep.subr.bf16.mxu0 %v3334_v0 }
  0x32   :  { %2699 = vmatmul.mubr.f32.vlgmr.msra.gmra.mrb[0].mxu1 %v3336_v1  ;;  %2682 = vmatmul.mubr.msk.f32.gmra.mrb[2].mxu0 %vm78_vm1, %v64_v36 }
  0x33   :  { %2709 = vmatprep.mubr.msk.f32.mxu1 %vm3335_vm0, %v3336_v1  ;;  %2977 = vmatpush3.bf16.msra.mxu1 %v3482_v37 }
  0x34   :  { %2978 = vmatprep.subr.bf16.mxu1 %v3334_v0  ;;  %2684 = vmatprep.mubr.msk.f32.mxu0 %vm78_vm1, %v65_v40 }
  0x35   :  { %2986 = vmatpush3.bf16.msra.mxu0 %v3505_v44 }
  0x36   :  { %2685 = vmatmul.mubr.msk.f32.gmra.mrb[4].mxu0 %vm78_vm1, %v66_v45  ;;  %2993 = vmatprep.subr.bf16.mxu0 %v3334_v0 }
  0x37   :  { %2980 = vmatpush3.bf16.msra.mxu1 %v3503_v43  ;;  %2687 = vmatprep.mubr.msk.f32.mxu0 %vm78_vm1, %v67_v46 }
  0x38   :  { %2987 = vmatprep.subr.bf16.mxu1 %v3334_v0 }
  0x3a   :  { %2710 = vmatmul.mubr.f32.vlgmr.msra.gmra.mrb[2].mxu1 %v3336_v1  ;;  %2688 = vmatmul.mubr.msk.f32.gmra.mrb[6].mxu0 %vm78_vm1, %v68_v47 }
  0x3b   :  { %2989 = vmatpush3.bf16.msra.mxu1 %v3426_v8  ;;  %2720 = vmatprep.mubr.msk.f32.mxu0 %vm3335_vm0, %v3336_v1 }
  0x3c   :  { %2990 = vmatprep.subr.bf16.mxu1 %v3334_v0  ;;  %2731 = vmatprep.mubr.msk.f32.mxu1 %vm3335_vm0, %v3336_v1 }
  0x3f   :  { %2992 = vmatpush3.bf16.msra.mxu1 %v3439_v12 }
  0x40   :  { %2999 = vmatprep.subr.bf16.mxu1 %v3334_v0 }
 0x101   :  { %v3454_v14 = vpop.f32.mrb[0].mxu0 }
 0x102   :  { %v169_v15 = vpop.f32.mrb[1].mxu0  ;;  %v175_v60 = vadd.f32 %v3454_v14, %v3452_v13 }
 0x103   :  { %v170_v16 = vadd.f32 %v3452_v13, %v169_v15 }
 0x105   :  { %v289_v17 = vpop.f32.mrb[0].mxu1  ;;  %v3537_v51 = vpop.f32.mrb[2].mxu0 }
 0x106   :  { %v293_v18 = vadd.f32 %v289_v17, %v170_v16  ;;  %v2700_v19 = vpop.f32.mrb[1].mxu1  ;;  %v3539_v52 = vpop.f32.mrb[3].mxu0 }
 0x108   :  { %3129 = vtanh.f32 %v293_v18  ;;  %v2499_v21 = vmul.f32 -1.442695, %v293_v18 }
 0x109   :  { %v3541_v53 = vpop.f32.mrb[4].mxu0 }
 0x10a   :  { %3131 = vpow2.f32 %v2499_v21  ;;  %v3543_v54 = vpop.f32.mrb[5].mxu0 }
 0x10d   :  { %v392_v55 = vpop.f32.mrb[2].mxu1  ;;  %v3545_v56 = vpop.f32.mrb[6].mxu0 }
 0x10e   :  { %v2711_v57 = vpop.f32.mrb[3].mxu1  ;;  %v3547_v58 = vpop.f32.mrb[7].mxu0 }
 0x112   :  { %v3130_v20 = vpop.eup %3129 }
 0x113   :  { %303 = vrot.lane.b32.xlu0 %v3130_v20, %s3337_s25 }
 0x114   :  { %v3132_v22 = vpop.eup %3131 }
 0x115   :  { %v297_v23 = vadd.f32 1.0, %v3132_v22 }
 0x117   :  { %3133 = vrcp.f32 %v297_v23 }
 0x121   :  { %v3134_v24 = vpop.eup %3133 }
 0x122   :  { %v301_v27 = vmul.f32 0.0, %v3134_v24 }
 0x185   :  { %v304_v25 = vpop.permute.xlu0 %303 }
 0x186   :  { %v306_v26 = vmul.f32 %v3134_v24, %v304_v25 }
 0x188   :  { %308 = vrot.lane.b32.xlu0 %v306_v26, %s3338_s26 }
 0x1fa   :  { %v309_v28 = vpop.permute.xlu0 %308 }
 0x1fb   :  { %v3459_v29 = vadd.f32 %v309_v28, %v301_v27 }
 0x1fd   :  { %3135 = vtanh.f32 %v3459_v29 }
 0x207   :  { %v3136_v48 = vpop.eup %3135 }
 0x208   :  { %314 = vrot.lane.b32.xlu1 %v3136_v48, %s3337_s25  ;;  %v180_v48 = vadd.f32 %v3452_v13, %v3539_v52 }
 0x27a   :  { %v315_v49 = vpop.permute.xlu1 %314 }
 0x27b   :  { %v317_v50 = vmul.f32 %v3134_v24, %v315_v49 }
 0x27d   :  { %397 = vrot.lane.b32.xlu1 %v317_v50, %s3338_s26 }
 0x2ef   :  { %v398_v59 = vpop.permute.xlu1 %397 }
 0x2f0   :  { %2721 = vmatmul.mubr.msk.f32.vlgmr.msra.gmra.mrb[8].mxu0 %vm219_vm2, %v398_v59  ;;  %2732 = vmatmul.mubr.msk.f32.vlgmr.msra.gmra.mrb[4].mxu1 %vm219_vm2, %v398_v59 }
 0x2f1   :  { %3001 = vmatpush3.bf16.msra.mxu1 %v3471_v33  ;;  %2995 = vmatpush3.bf16.msra.mxu0 %v3482_v37 }
 0x2f2   :  { %3002 = vmatprep.subr.bf16.mxu1 %v3334_v0  ;;  %2996 = vmatprep.subr.bf16.mxu0 %v3334_v0 }
 0x2f3   :  { %2753 = vmatprep.mubr.msk.f32.mxu1 %vm3335_vm0, %v3336_v1  ;;  %2742 = vmatprep.mubr.msk.f32.mxu0 %vm3335_vm0, %v3336_v1 }
 0x2f5   :  { %3004 = vmatpush3.bf16.msra.mxu1 %v3505_v44  ;;  %2998 = vmatpush3.bf16.msra.mxu0 %v3503_v43 }
 0x2f6   :  { %3005 = vmatprep.subr.bf16.mxu0 %v3334_v0  ;;  %3011 = vmatprep.subr.bf16.mxu1 %v3334_v0 }
 0x3c3   :  { %v467_v62 = vpop.f32.mrb[8].mxu0  ;;  %v562_v63 = vpop.f32.mrb[4].mxu1 }
 0x3c4   :  { %v468_v2 = vadd.f32 %v467_v62, %v392_v55  ;;  %v566_v3 = vadd.f32 %v562_v63, %v175_v60  ;;  %v2722_v4 = vpop.f32.mrb[9].mxu0  ;;  %v2733_v5 = vpop.f32.mrb[5].mxu1 }
 0x3c6   :  { %v471_v6 = vadd.f32 %v3568_v61, %v468_v2  ;;  %3137 = vtanh.f32 %v566_v3  ;;  %v2503_v10 = vmul.f32 -1.442695, %v566_v3 }
 0x3c8   :  { %3139 = vtanh.f32 %v471_v6  ;;  %v2501_v11 = vmul.f32 -1.442695, %v471_v6 }
 0x3c9   :  { %3141 = vpow2.f32 %v2503_v10 }
 0x3ca   :  { %3143 = vpow2.f32 %v2501_v11 }
 0x3d0   :  { %v3138_v7 = vpop.eup %3137 }
 0x3d1   :  { %576 = vrot.lane.b32.xlu1 %v3138_v7, %s3337_s25 }
 0x3d2   :  { %v3140_v9 = vpop.eup %3139 }
 0x3d3   :  { %481 = vrot.lane.b32.xlu0 %v3140_v9, %s3337_s25  ;;  %v3142_v14 = vpop.eup %3141 }
 0x3d4   :  { %v3144_v15 = vpop.eup %3143  ;;  %v570_v16 = vadd.f32 1.0, %v3142_v14 }
 0x3d5   :  { %v475_v17 = vadd.f32 1.0, %v3144_v15 }
 0x3d6   :  { %3145 = vrcp.f32 %v570_v16 }
 0x3d7   :  { %3147 = vrcp.f32 %v475_v17 }
 0x3e0   :  { %v3146_v18 = vpop.eup %3145 }
 0x3e1   :  { %v3148_v21 = vpop.eup %3147  ;;  %v574_v24 = vmul.f32 %v3146_v18, %v3459_v29 }
 0x3e2   :  { %v479_v27 = vmul.f32 0.0, %v3148_v21 }
 0x443   :  { %v577_v19 = vpop.permute.xlu1 %576 }
 0x444   :  { %v579_v20 = vmul.f32 %v3146_v18, %v577_v19 }
 0x445   :  { %v482_v22 = vpop.permute.xlu0 %481 }
 0x446   :  { %v484_v23 = vmul.f32 %v3148_v21, %v482_v22  ;;  %581 = vrot.lane.b32.xlu1 %v579_v20, %s3338_s26 }
 0x448   :  { %486 = vrot.lane.b32.xlu0 %v484_v23, %s3338_s26 }
 0x4b8   :  { %v582_v25 = vpop.permute.xlu1 %581 }
 0x4b9   :  { %v3576_v26 = vadd.f32 %v582_v25, %v574_v24 }
 0x4ba   :  { %v487_v28 = vpop.permute.xlu0 %486 }
 0x4bb   :  { %3149 = vtanh.f32 %v3576_v26  ;;  %v3579_v30 = vadd.f32 %v487_v28, %v479_v27 }
 0x4bd   :  { %3151 = vtanh.f32 %v3579_v30 }
 0x4c5   :  { %v3150_v31 = vpop.eup %3149 }
 0x4c6   :  { %587 = vrot.lane.b32.xlu1 %v3150_v31, %s3337_s25  ;;  %v185_v31 = vadd.f32 %v3537_v51, %v3452_v13 }
 0x4c7   :  { %v3152_v32 = vpop.eup %3151 }
 0x4c8   :  { %492 = vrot.lane.b32.xlu0 %v3152_v32, %s3337_s25 }
 0x538   :  { %v588_v34 = vpop.permute.xlu1 %587 }
 0x539   :  { %v590_v35 = vmul.f32 %v3146_v18, %v588_v34 }
 0x53a   :  { %v493_v29 = vpop.permute.xlu0 %492 }
 0x53b   :  { %v495_v36 = vmul.f32 %v3148_v21, %v493_v29  ;;  %667 = vrot.lane.b32.xlu1 %v590_v35, %s3338_s26 }
 0x53d   :  { %592 = vrot.lane.b32.xlu0 %v495_v36, %s3338_s26 }
 0x5ad   :  { %v668_v38 = vpop.permute.xlu1 %667 }
 0x5ae   :  { %2754 = vmatmul.mubr.msk.f32.vlgmr.msra.gmra.mrb[6].mxu1 %vm219_vm2, %v668_v38 }
 0x5af   :  { %v593_v39 = vpop.permute.xlu0 %592  ;;  %3013 = vmatpush3.bf16.msra.mxu1 %v3482_v37  ;;  %2775 = vmatprep.mubr.msk.f32.mxu1 %vm3335_vm0, %v3336_v1 }
 0x5b0   :  { %2743 = vmatmul.mubr.msk.f32.vlgmr.msra.gmra.mrb[10].mxu0 %vm219_vm2, %v593_v39  ;;  %3014 = vmatprep.subr.bf16.mxu1 %v3334_v0 }
 0x5b1   :  { %3007 = vmatpush3.bf16.msra.mxu0 %v3426_v8  ;;  %2764 = vmatprep.mubr.msk.f32.mxu0 %vm3335_vm0, %v3336_v1 }
 0x5b2   :  { %3008 = vmatprep.subr.bf16.mxu0 %v3334_v0 }
 0x5b3   :  { %3016 = vmatpush3.bf16.msra.mxu1 %v3503_v43 }
 0x5b4   :  { %3023 = vmatprep.subr.bf16.mxu1 %v3334_v0 }
 0x5b5   :  { %3010 = vmatpush3.bf16.msra.mxu0 %v3439_v12 }
 0x5b6   :  { %3017 = vmatprep.subr.bf16.mxu0 %v3334_v0 }
 0x5b8   :  { %2765 = vmatmul.mubr.msk.f32.vlgmr.msra.gmra.mrb[12].mxu0 %vm219_vm2, %v668_v38 }
 0x5b9   :  { %3019 = vmatpush3.bf16.msra.mxu0 %v3471_v33  ;;  %2786 = vmatprep.mubr.msk.f32.mxu0 %vm3335_vm0, %v3336_v1 }
 0x5ba   :  { %3020 = vmatprep.subr.bf16.mxu0 %v3334_v0 }
 0x5bd   :  { %3022 = vmatpush3.bf16.msra.mxu0 %v3505_v44 }
 0x5be   :  { %3029 = vmatprep.subr.bf16.mxu0 %v3334_v0 }
 0x681   :  { %v737_v40 = vpop.f32.mrb[6].mxu1 }
 0x682   :  { %v2755_v41 = vpop.f32.mrb[7].mxu1 }
 0x683   :  { %v662_v42 = vpop.f32.mrb[10].mxu0 }
 0x684   :  { %v738_v45 = vadd.f32 %v737_v40, %v662_v42  ;;  %v2744_v46 = vpop.f32.mrb[11].mxu0 }
 0x686   :  { %v741_v47 = vadd.f32 %v3568_v61, %v738_v45 }
 0x688   :  { %3153 = vtanh.f32 %v741_v47  ;;  %v2506_v60 = vmul.f32 -1.442695, %v741_v47 }
 0x68b   :  { %v832_v49 = vpop.f32.mrb[12].mxu0 }
 0x68c   :  { %v836_v50 = vadd.f32 %v832_v49, %v180_v48  ;;  %v2766_v55 = vpop.f32.mrb[13].mxu0 }
 0x68e   :  { %3155 = vtanh.f32 %v836_v50  ;;  %v2508_v62 = vmul.f32 -1.442695, %v836_v50 }
 0x68f   :  { %3157 = vpow2.f32 %v2506_v60 }
 0x690   :  { %3159 = vpow2.f32 %v2508_v62 }
 0x692   :  { %v3154_v57 = vpop.eup %3153 }
 0x693   :  { %751 = vrot.lane.b32.xlu0 %v3154_v57, %s3337_s25 }
 0x698   :  { %v3156_v59 = vpop.eup %3155 }
 0x699   :  { %846 = vrot.lane.b32.xlu1 %v3156_v59, %s3337_s25  ;;  %v3158_v63 = vpop.eup %3157 }
 0x69a   :  { %v745_v2 = vadd.f32 1.0, %v3158_v63  ;;  %v3160_v3 = vpop.eup %3159 }
 0x69b   :  { %v840_v4 = vadd.f32 1.0, %v3160_v3 }
 0x69c   :  { %3161 = vrcp.f32 %v745_v2 }
 0x69d   :  { %3163 = vrcp.f32 %v840_v4 }
 0x6a6   :  { %v3162_v52 = vpop.eup %3161 }
 0x6a7   :  { %v3164_v7 = vpop.eup %3163  ;;  %v749_v11 = vmul.f32 %v3162_v52, %v3579_v30 }
 0x6a8   :  { %v844_v16 = vmul.f32 %v3164_v7, %v3576_v26 }
 0x705   :  { %v752_v5 = vpop.permute.xlu0 %751 }
 0x706   :  { %v754_v6 = vmul.f32 %v3162_v52, %v752_v5 }
 0x708   :  { %756 = vrot.lane.b32.xlu0 %v754_v6, %s3338_s26 }
 0x70b   :  { %v847_v9 = vpop.permute.xlu1 %846 }
 0x70c   :  { %v849_v10 = vmul.f32 %v3164_v7, %v847_v9 }
 0x70e   :  { %851 = vrot.lane.b32.xlu1 %v849_v10, %s3338_s26 }
 0x77a   :  { %v757_v14 = vpop.permute.xlu0 %756 }
 0x77b   :  { %v3615_v15 = vadd.f32 %v757_v14, %v749_v11 }
 0x77d   :  { %3165 = vtanh.f32 %v3615_v15 }
 0x780   :  { %v852_v17 = vpop.permute.xlu1 %851 }
 0x781   :  { %v3619_v18 = vadd.f32 %v852_v17, %v844_v16 }
 0x783   :  { %3167 = vtanh.f32 %v3619_v18 }
 0x787   :  { %v3166_v19 = vpop.eup %3165 }
 0x788   :  { %762 = vrot.lane.b32.xlu0 %v3166_v19, %s3337_s25 }
 0x78d   :  { %v3168_v20 = vpop.eup %3167 }
 0x78e   :  { %857 = vrot.lane.b32.xlu1 %v3168_v20, %s3337_s25 }
 0x7fa   :  { %v763_v21 = vpop.permute.xlu0 %762 }
 0x7fb   :  { %v765_v22 = vmul.f32 %v3162_v52, %v763_v21  ;;  %v190_v21 = vadd.f32 %v3452_v13, %v3543_v54 }
 0x7fd   :  { %862 = vrot.lane.b32.xlu0 %v765_v22, %s3338_s26 }
 0x800   :  { %v858_v23 = vpop.permute.xlu1 %857 }
 0x801   :  { %v860_v24 = vmul.f32 %v3164_v7, %v858_v23 }
 0x803   :  { %937 = vrot.lane.b32.xlu1 %v860_v24, %s3338_s26 }
 0x86f   :  { %v863_v25 = vpop.permute.xlu0 %862 }
 0x870   :  { %2776 = vmatmul.mubr.msk.f32.vlgmr.msra.gmra.mrb[8].mxu1 %vm219_vm2, %v863_v25 }
 0x871   :  { %3025 = vmatpush3.bf16.msra.mxu1 %v3426_v8  ;;  %2797 = vmatprep.mubr.msk.f32.mxu1 %vm3335_vm0, %v3336_v1 }
 0x872   :  { %3026 = vmatprep.subr.bf16.mxu1 %v3334_v0 }
 0x875   :  { %3028 = vmatpush3.bf16.msra.mxu1 %v3439_v12  ;;  %v938_v26 = vpop.permute.xlu1 %937 }
 0x876   :  { %2787 = vmatmul.mubr.msk.f32.vlgmr.msra.gmra.mrb[14].mxu0 %vm219_vm2, %v938_v26  ;;  %3035 = vmatprep.subr.bf16.mxu1 %v3334_v0 }
 0x877   :  { %3031 = vmatpush3.bf16.msra.mxu0 %v3482_v37  ;;  %2808 = vmatprep.mubr.msk.f32.mxu0 %vm3335_vm0, %v3336_v1 }
 0x878   :  { %2798 = vmatmul.mubr.msk.f32.vlgmr.msra.gmra.mrb[10].mxu1 %vm219_vm2, %v938_v26  ;;  %3032 = vmatprep.subr.bf16.mxu0 %v3334_v0 }
 0x879   :  { %3037 = vmatpush3.bf16.msra.mxu1 %v3471_v33  ;;  %2819 = vmatprep.mubr.msk.f32.mxu1 %vm3335_vm0, %v3336_v1 }
 0x87a   :  { %3038 = vmatprep.subr.bf16.mxu1 %v3334_v0 }
 0x87b   :  { %3034 = vmatpush3.bf16.msra.mxu0 %v3503_v43 }
 0x87c   :  { %3041 = vmatprep.subr.bf16.mxu0 %v3334_v0 }
 0x87d   :  { %3040 = vmatpush3.bf16.msra.mxu1 %v3505_v44 }
 0x87e   :  { %3047 = vmatprep.subr.bf16.mxu1 %v3334_v0 }
 0x943   :  { %v932_v27 = vpop.f32.mrb[8].mxu1 }
 0x944   :  { %v2777_v28 = vpop.f32.mrb[9].mxu1 }
 0x949   :  { %v1007_v30 = vpop.f32.mrb[14].mxu0 }
 0x94a   :  { %v1008_v32 = vadd.f32 %v1007_v30, %v932_v27  ;;  %v2788_v34 = vpop.f32.mrb[15].mxu0 }
 0x94b   :  { %v1102_v35 = vpop.f32.mrb[10].mxu1 }
 0x94c   :  { %v1011_v29 = vadd.f32 %v3568_v61, %v1008_v32  ;;  %v1106_v36 = vadd.f32 %v1102_v35, %v185_v31  ;;  %v2799_v38 = vpop.f32.mrb[11].mxu1 }
 0x94e   :  { %3169 = vtanh.f32 %v1011_v29  ;;  %v2511_v41 = vmul.f32 -1.442695, %v1011_v29  ;;  %v2513_v42 = vmul.f32 -1.442695, %v1106_v36 }
 0x94f   :  { %3171 = vtanh.f32 %v1106_v36 }
 0x950   :  { %3173 = vpow2.f32 %v2511_v41 }
 0x951   :  { %3175 = vpow2.f32 %v2513_v42 }
 0x958   :  { %v3170_v39 = vpop.eup %3169 }
 0x959   :  { %v3172_v40 = vpop.eup %3171  ;;  %1021 = vrot.lane.b32.xlu0 %v3170_v39, %s3337_s25 }
 0x95a   :  { %1116 = vrot.lane.b32.xlu1 %v3172_v40, %s3337_s25  ;;  %v3174_v51 = vpop.eup %3173 }
 0x95b   :  { %v3176_v45 = vpop.eup %3175  ;;  %v1015_v46 = vadd.f32 1.0, %v3174_v51 }
 0x95c   :  { %v1110_v47 = vadd.f32 1.0, %v3176_v45 }
 0x95d   :  { %3177 = vrcp.f32 %v1015_v46 }
 0x95e   :  { %3179 = vrcp.f32 %v1110_v47 }
 0x967   :  { %v3178_v48 = vpop.eup %3177 }
 0x968   :  { %v3180_v50 = vpop.eup %3179  ;;  %v1019_v60 = vmul.f32 %v3178_v48, %v3615_v15 }
 0x969   :  { %v1114_v62 = vmul.f32 %v3180_v50, %v3619_v18 }
 0x9cb   :  { %v1022_v49 = vpop.permute.xlu0 %1021 }
 0x9cc   :  { %v1117_v55 = vpop.permute.xlu1 %1116  ;;  %v1024_v57 = vmul.f32 %v3178_v48, %v1022_v49 }
 0x9cd   :  { %v1119_v59 = vmul.f32 %v3180_v50, %v1117_v55 }
 0x9ce   :  { %1026 = vrot.lane.b32.xlu0 %v1024_v57, %s3338_s26 }
 0x9cf   :  { %1121 = vrot.lane.b32.xlu1 %v1119_v59, %s3338_s26 }
 0xa40   :  { %v1027_v63 = vpop.permute.xlu0 %1026 }
 0xa41   :  { %v1122_v2 = vpop.permute.xlu1 %1121  ;;  %v3656_v3 = vadd.f32 %v1027_v63, %v1019_v60 }
 0xa42   :  { %v3658_v4 = vadd.f32 %v1122_v2, %v1114_v62 }
 0xa43   :  { %3181 = vtanh.f32 %v3656_v3 }
 0xa44   :  { %3183 = vtanh.f32 %v3658_v4 }
 0xa4d   :  { %v3182_v52 = vpop.eup %3181 }
 0xa4e   :  { %v3184_v5 = vpop.eup %3183  ;;  %1032 = vrot.lane.b32.xlu0 %v3182_v52, %s3337_s25  ;;  %v195_v52 = vadd.f32 %v3541_v53, %v3452_v13 }
 0xa4f   :  { %1127 = vrot.lane.b32.xlu1 %v3184_v5, %s3337_s25 }
 0xac0   :  { %v1033_v6 = vpop.permute.xlu0 %1032 }
 0xac1   :  { %v1128_v7 = vpop.permute.xlu1 %1127  ;;  %v1035_v9 = vmul.f32 %v3178_v48, %v1033_v6 }
 0xac2   :  { %v1130_v10 = vmul.f32 %v3180_v50, %v1128_v7 }
 0xac3   :  { %1132 = vrot.lane.b32.xlu0 %v1035_v9, %s3338_s26 }
 0xac4   :  { %1207 = vrot.lane.b32.xlu1 %v1130_v10, %s3338_s26 }
 0xb35   :  { %v1133_v11 = vpop.permute.xlu0 %1132 }
 0xb36   :  { %v1208_v14 = vpop.permute.xlu1 %1207  ;;  %2809 = vmatmul.mubr.msk.f32.vlgmr.msra.gmra.mrb[16].mxu0 %vm219_vm2, %v1133_v11 }
 0xb37   :  { %2820 = vmatmul.mubr.msk.f32.vlgmr.msra.gmra.mrb[12].mxu1 %vm219_vm2, %v1208_v14  ;;  %3043 = vmatpush3.bf16.msra.mxu0 %v3426_v8 }
 0xb38   :  { %3044 = vmatprep.subr.bf16.mxu0 %v3334_v0  ;;  %2830 = vmatprep.mubr.msk.f32.mxu0 %vm3335_vm0, %v3336_v1 }
 0xb39   :  { %3049 = vmatpush3.bf16.msra.mxu1 %v3482_v37  ;;  %2841 = vmatprep.mubr.msk.f32.mxu1 %vm3335_vm0, %v3336_v1 }
 0xb3a   :  { %3050 = vmatprep.subr.bf16.mxu1 %v3334_v0 }
 0xb3b   :  { %3046 = vmatpush3.bf16.msra.mxu0 %v3439_v12 }
 0xb3c   :  { %3053 = vmatprep.subr.bf16.mxu0 %v3334_v0 }
 0xb3d   :  { %3052 = vmatpush3.bf16.msra.mxu1 %v3503_v43 }
 0xb3e   :  { %2831 = vmatmul.mubr.msk.f32.vlgmr.msra.gmra.mrb[18].mxu0 %vm219_vm2, %v1208_v14  ;;  %3059 = vmatprep.subr.bf16.mxu1 %v3334_v0 }
 0xb3f   :  { %3055 = vmatpush3.bf16.msra.mxu0 %v3471_v33  ;;  %2852 = vmatprep.mubr.msk.f32.mxu0 %vm3335_vm0, %v3336_v1 }
 0xb40   :  { %3056 = vmatprep.subr.bf16.mxu0 %v3334_v0 }
 0xb43   :  { %3058 = vmatpush3.bf16.msra.mxu0 %v3505_v44 }
 0xb44   :  { %3065 = vmatprep.subr.bf16.mxu0 %v3334_v0 }
 0xc09   :  { %v1202_v15 = vpop.f32.mrb[16].mxu0 }
 0xc0a   :  { %v1277_v16 = vpop.f32.mrb[12].mxu1  ;;  %v2810_v17 = vpop.f32.mrb[17].mxu0 }
 0xc0b   :  { %v1278_v18 = vadd.f32 %v1277_v16, %v1202_v15  ;;  %v2821_v19 = vpop.f32.mrb[13].mxu1 }
 0xc0d   :  { %v1281_v20 = vadd.f32 %v3568_v61, %v1278_v18 }
 0xc0f   :  { %3185 = vtanh.f32 %v1281_v20  ;;  %v2516_v27 = vmul.f32 -1.442695, %v1281_v20 }
 0xc11   :  { %v1372_v22 = vpop.f32.mrb[18].mxu0 }
 0xc12   :  { %v1376_v23 = vadd.f32 %v1372_v22, %v190_v21  ;;  %v2832_v24 = vpop.f32.mrb[19].mxu0 }
 0xc14   :  { %3187 = vtanh.f32 %v1376_v23  ;;  %v2518_v28 = vmul.f32 -1.442695, %v1376_v23 }
 0xc15   :  { %3189 = vpow2.f32 %v2516_v27 }
 0xc16   :  { %3191 = vpow2.f32 %v2518_v28 }
 0xc19   :  { %v3186_v25 = vpop.eup %3185 }
 0xc1a   :  { %1291 = vrot.lane.b32.xlu0 %v3186_v25, %s3337_s25 }
 0xc1e   :  { %v3188_v26 = vpop.eup %3187 }
 0xc1f   :  { %1386 = vrot.lane.b32.xlu1 %v3188_v26, %s3337_s25  ;;  %v3190_v30 = vpop.eup %3189 }
 0xc20   :  { %v1285_v31 = vadd.f32 1.0, %v3190_v30  ;;  %v3192_v32 = vpop.eup %3191 }
 0xc21   :  { %v1380_v34 = vadd.f32 1.0, %v3192_v32 }
 0xc22   :  { %3193 = vrcp.f32 %v1285_v31 }
 0xc23   :  { %3195 = vrcp.f32 %v1380_v34 }
 0xc2c   :  { %v3194_v54 = vpop.eup %3193 }
 0xc2d   :  { %v3196_v36 = vpop.eup %3195  ;;  %v1289_v40 = vmul.f32 %v3194_v54, %v3656_v3 }
 0xc2e   :  { %v1384_v51 = vmul.f32 %v3196_v36, %v3658_v4 }
 0xc8c   :  { %v1292_v35 = vpop.permute.xlu0 %1291 }
 0xc8d   :  { %v1294_v29 = vmul.f32 %v3194_v54, %v1292_v35 }
 0xc8f   :  { %1296 = vrot.lane.b32.xlu0 %v1294_v29, %s3338_s26 }
 0xc91   :  { %v1387_v38 = vpop.permute.xlu1 %1386 }
 0xc92   :  { %v1389_v39 = vmul.f32 %v3196_v36, %v1387_v38 }
 0xc94   :  { %1391 = vrot.lane.b32.xlu1 %v1389_v39, %s3338_s26 }
 0xd01   :  { %v1297_v41 = vpop.permute.xlu0 %1296 }
 0xd02   :  { %v3695_v42 = vadd.f32 %v1297_v41, %v1289_v40 }
 0xd04   :  { %3197 = vtanh.f32 %v3695_v42 }
 0xd06   :  { %v1392_v45 = vpop.permute.xlu1 %1391 }
 0xd07   :  { %v3699_v46 = vadd.f32 %v1392_v45, %v1384_v51 }
 0xd09   :  { %3199 = vtanh.f32 %v3699_v46 }
 0xd0e   :  { %v3198_v47 = vpop.eup %3197 }
 0xd0f   :  { %1302 = vrot.lane.b32.xlu0 %v3198_v47, %s3337_s25  ;;  %v200_v47 = vadd.f32 %v3452_v13, %v3547_v58 }
 0xd13   :  { %v3200_v48 = vpop.eup %3199 }
 0xd14   :  { %1397 = vrot.lane.b32.xlu1 %v3200_v48, %s3337_s25 }
 0xd81   :  { %v1303_v49 = vpop.permute.xlu0 %1302 }
 0xd82   :  { %v1305_v50 = vmul.f32 %v3194_v54, %v1303_v49 }
 0xd84   :  { %1402 = vrot.lane.b32.xlu0 %v1305_v50, %s3338_s26 }
 0xd86   :  { %v1398_v55 = vpop.permute.xlu1 %1397 }
 0xd87   :  { %v1400_v57 = vmul.f32 %v3196_v36, %v1398_v55 }
 0xd89   :  { %1477 = vrot.lane.b32.xlu1 %v1400_v57, %s3338_s26 }
 0xdf6   :  { %v1403_v59 = vpop.permute.xlu0 %1402 }
 0xdf7   :  { %2842 = vmatmul.mubr.msk.f32.vlgmr.msra.gmra.mrb[14].mxu1 %vm219_vm2, %v1403_v59 }
 0xdf8   :  { %3061 = vmatpush3.bf16.msra.mxu1 %v3426_v8  ;;  %2863 = vmatprep.mubr.msk.f32.mxu1 %vm3335_vm0, %v3336_v1 }
 0xdf9   :  { %3062 = vmatprep.subr.bf16.mxu1 %v3334_v0 }
 0xdfb   :  { %v1478_v60 = vpop.permute.xlu1 %1477 }
 0xdfc   :  { %3064 = vmatpush3.bf16.msra.mxu1 %v3439_v12  ;;  %2853 = vmatmul.mubr.msk.f32.vlgmr.msra.gmra.mrb[20].mxu0 %vm219_vm2, %v1478_v60 }
 0xdfd   :  { %3067 = vmatpush3.bf16.msra.mxu0 %v3482_v37  ;;  %3071 = vmatprep.subr.bf16.mxu1 %v3334_v0 }
 0xdfe   :  { %3068 = vmatprep.subr.bf16.mxu0 %v3334_v0  ;;  %2874 = vmatprep.mubr.msk.f32.mxu0 %vm3335_vm0, %v3336_v1 }
 0xdff   :  { %2864 = vmatmul.mubr.msk.f32.vlgmr.msra.gmra.mrb[16].mxu1 %vm219_vm2, %v1478_v60 }
 0xe00   :  { %3073 = vmatpush3.bf16.msra.mxu1 %v3471_v33  ;;  %2885 = vmatprep.mubr.msk.f32.mxu1 %vm3335_vm0, %v3336_v1 }
 0xe01   :  { %3070 = vmatpush3.bf16.msra.mxu0 %v3503_v43  ;;  %3074 = vmatprep.subr.bf16.mxu1 %v3334_v0 }
 0xe02   :  { %3077 = vmatprep.subr.bf16.mxu0 %v3334_v0 }
 0xe04   :  { %3076 = vmatpush3.bf16.msra.mxu1 %v3505_v44 }
 0xe05   :  { %3083 = vmatprep.subr.bf16.mxu1 %v3334_v0 }
 0xeca   :  { %v1472_v62 = vpop.f32.mrb[14].mxu1 }
 0xecb   :  { %v2843_v63 = vpop.f32.mrb[15].mxu1 }
 0xecf   :  { %v1547_v2 = vpop.f32.mrb[20].mxu0 }
 0xed0   :  { %v1548_v3 = vadd.f32 %v1547_v2, %v1472_v62  ;;  %v2854_v4 = vpop.f32.mrb[21].mxu0 }
 0xed2   :  { %v1551_v5 = vadd.f32 %v3568_v61, %v1548_v3  ;;  %v1642_v6 = vpop.f32.mrb[16].mxu1 }
 0xed3   :  { %v1646_v7 = vadd.f32 %v1642_v6, %v195_v52  ;;  %v2865_v9 = vpop.f32.mrb[17].mxu1 }
 0xed4   :  { %3201 = vtanh.f32 %v1551_v5  ;;  %v2521_v14 = vmul.f32 -1.442695, %v1551_v5 }
 0xed5   :  { %3203 = vtanh.f32 %v1646_v7  ;;  %v2523_v15 = vmul.f32 -1.442695, %v1646_v7 }
 0xed6   :  { %3205 = vpow2.f32 %v2521_v14 }
 0xed7   :  { %3207 = vpow2.f32 %v2523_v15 }
 0xede   :  { %v3202_v10 = vpop.eup %3201 }
 0xedf   :  { %v3204_v11 = vpop.eup %3203  ;;  %1561 = vrot.lane.b32.xlu0 %v3202_v10, %s3337_s25 }
 0xee0   :  { %1656 = vrot.lane.b32.xlu1 %v3204_v11, %s3337_s25  ;;  %v3206_v16 = vpop.eup %3205 }
 0xee1   :  { %v3208_v17 = vpop.eup %3207  ;;  %v1555_v53 = vadd.f32 1.0, %v3206_v16 }
 0xee2   :  { %v1650_v18 = vadd.f32 1.0, %v3208_v17 }
 0xee3   :  { %3209 = vrcp.f32 %v1555_v53 }
 0xee4   :  { %3211 = vrcp.f32 %v1650_v18 }
 0xeed   :  { %v3210_v19 = vpop.eup %3209 }
 0xeee   :  { %v3212_v21 = vpop.eup %3211  ;;  %v1559_v25 = vmul.f32 %v3210_v19, %v3695_v42 }
 0xeef   :  { %v1654_v26 = vmul.f32 %v3212_v21, %v3699_v46 }
 0xf51   :  { %v1562_v20 = vpop.permute.xlu0 %1561 }
 0xf52   :  { %v1657_v22 = vpop.permute.xlu1 %1656  ;;  %v1564_v23 = vmul.f32 %v3210_v19, %v1562_v20 }
 0xf53   :  { %v1659_v24 = vmul.f32 %v3212_v21, %v1657_v22 }
 0xf54   :  { %1566 = vrot.lane.b32.xlu0 %v1564_v23, %s3338_s26 }
 0xf55   :  { %1661 = vrot.lane.b32.xlu1 %v1659_v24, %s3338_s26 }
 0xfc6   :  { %v1567_v27 = vpop.permute.xlu0 %1566 }
 0xfc7   :  { %v1662_v28 = vpop.permute.xlu1 %1661  ;;  %v3736_v30 = vadd.f32 %v1567_v27, %v1559_v25 }
 0xfc8   :  { %v3738_v31 = vadd.f32 %v1662_v28, %v1654_v26 }
 0xfc9   :  { %3213 = vtanh.f32 %v3736_v30 }
 0xfca   :  { %3215 = vtanh.f32 %v3738_v31 }
 0xfd3   :  { %v3214_v32 = vpop.eup %3213 }
 0xfd4   :  { %v3216_v34 = vpop.eup %3215  ;;  %1572 = vrot.lane.b32.xlu0 %v3214_v32, %s3337_s25 }
 0xfd5   :  { %1667 = vrot.lane.b32.xlu1 %v3216_v34, %s3337_s25 }
0x1046   :  { %v1573_v54 = vpop.permute.xlu0 %1572 }
0x1047   :  { %v1668_v35 = vpop.permute.xlu1 %1667  ;;  %v1575_v29 = vmul.f32 %v3210_v19, %v1573_v54 }
0x1048   :  { %v1670_v36 = vmul.f32 %v3212_v21, %v1668_v35 }
0x1049   :  { %1672 = vrot.lane.b32.xlu0 %v1575_v29, %s3338_s26 }
0x104a   :  { %1747 = vrot.lane.b32.xlu1 %v1670_v36, %s3338_s26 }
0x10bb   :  { %v1673_v38 = vpop.permute.xlu0 %1672 }
0x10bc   :  { %v1748_v39 = vpop.permute.xlu1 %1747  ;;  %2875 = vmatmul.mubr.msk.f32.vlgmr.msra.gmra.mrb[22].mxu0 %vm219_vm2, %v1673_v38 }
0x10bd   :  { %2886 = vmatmul.mubr.msk.f32.vlgmr.msra.gmra.mrb[18].mxu1 %vm219_vm2, %v1748_v39  ;;  %3079 = vmatpush3.bf16.msra.mxu0 %v3426_v8 }
0x10be   :  { %3080 = vmatprep.subr.bf16.mxu0 %v3334_v0  ;;  %2896 = vmatprep.mubr.msk.f32.mxu0 %vm3335_vm0, %v3336_v1 }
0x10bf   :  { %3085 = vmatpush3.bf16.msra.mxu1 %v3482_v37  ;;  %2907 = vmatprep.mubr.msk.f32.mxu1 %vm3335_vm0, %v3336_v1 }
0x10c0   :  { %3086 = vmatprep.subr.bf16.mxu1 %v3334_v0 }
0x10c1   :  { %3082 = vmatpush3.bf16.msra.mxu0 %v3439_v12 }
0x10c2   :  { %3089 = vmatprep.subr.bf16.mxu0 %v3334_v0 }
0x10c3   :  { %3088 = vmatpush3.bf16.msra.mxu1 %v3503_v43 }
0x10c4   :  { %2897 = vmatmul.mubr.msk.f32.vlgmr.msra.gmra.mrb[24].mxu0 %vm219_vm2, %v1748_v39  ;;  %3095 = vmatprep.subr.bf16.mxu1 %v3334_v0 }
0x10c5   :  { %3091 = vmatpush3.bf16.msra.mxu0 %v3471_v33  ;;  %2918 = vmatprep.mubr.msk.f32.mxu0 %vm3335_vm0, %v3336_v1 }
0x10c6   :  { %3092 = vmatprep.subr.bf16.mxu0 %v3334_v0 }
0x10c9   :  { %3094 = vmatpush3.bf16.msra.mxu0 %v3505_v44 }
0x10ca   :  { %3101 = vmatprep.subr.bf16.mxu0 %v3334_v0 }
0x118f   :  { %v1742_v40 = vpop.f32.mrb[22].mxu0 }
0x1190   :  { %v1817_v41 = vpop.f32.mrb[18].mxu1  ;;  %v2876_v42 = vpop.f32.mrb[23].mxu0 }
0x1191   :  { %v1818_v51 = vadd.f32 %v1817_v41, %v1742_v40  ;;  %v2887_v45 = vpop.f32.mrb[19].mxu1 }
0x1193   :  { %v1821_v46 = vadd.f32 %v3568_v61, %v1818_v51 }
0x1195   :  { %3217 = vtanh.f32 %v1821_v46  ;;  %v2526_v59 = vmul.f32 -1.442695, %v1821_v46 }
0x1197   :  { %v1912_v48 = vpop.f32.mrb[24].mxu0 }
0x1198   :  { %v1916_v49 = vadd.f32 %v1912_v48, %v200_v47  ;;  %v2898_v50 = vpop.f32.mrb[25].mxu0 }
0x119a   :  { %3219 = vtanh.f32 %v1916_v49  ;;  %v2528_v60 = vmul.f32 -1.442695, %v1916_v49 }
0x119b   :  { %3221 = vpow2.f32 %v2526_v59 }
0x119c   :  { %3223 = vpow2.f32 %v2528_v60 }
0x119f   :  { %v3218_v55 = vpop.eup %3217 }
0x11a0   :  { %1831 = vrot.lane.b32.xlu0 %v3218_v55, %s3337_s25 }
0x11a4   :  { %v3220_v57 = vpop.eup %3219 }
0x11a5   :  { %1926 = vrot.lane.b32.xlu1 %v3220_v57, %s3337_s25  ;;  %v3222_v62 = vpop.eup %3221 }
0x11a6   :  { %v1825_v63 = vadd.f32 1.0, %v3222_v62  ;;  %v3224_v2 = vpop.eup %3223 }
0x11a7   :  { %v1920_v3 = vadd.f32 1.0, %v3224_v2 }
0x11a8   :  { %3225 = vrcp.f32 %v1825_v63 }
0x11a9   :  { %3227 = vrcp.f32 %v1920_v3 }
0x11b2   :  { %v3226_v13 = vpop.eup %3225 }
0x11b3   :  { %v3228_v52 = vpop.eup %3227  ;;  %v1829_v7 = vmul.f32 %v3226_v13, %v3736_v30 }
0x11b4   :  { %v1924_v11 = vmul.f32 %v3228_v52, %v3738_v31 }
0x1212   :  { %v1832_v58 = vpop.permute.xlu0 %1831 }
0x1213   :  { %v1834_v4 = vmul.f32 %v3226_v13, %v1832_v58 }
0x1215   :  { %1836 = vrot.lane.b32.xlu0 %v1834_v4, %s3338_s26 }
0x1217   :  { %v1927_v5 = vpop.permute.xlu1 %1926 }
0x1218   :  { %v1929_v6 = vmul.f32 %v3228_v52, %v1927_v5 }
0x121a   :  { %1931 = vrot.lane.b32.xlu1 %v1929_v6, %s3338_s26 }
0x1287   :  { %v1837_v9 = vpop.permute.xlu0 %1836 }
0x1288   :  { %v3775_v10 = vadd.f32 %v1837_v9, %v1829_v7 }
0x128a   :  { %3229 = vtanh.f32 %v3775_v10 }
0x128c   :  { %v1932_v14 = vpop.permute.xlu1 %1931 }
0x128d   :  { %v3779_v15 = vadd.f32 %v1932_v14, %v1924_v11 }
0x128f   :  { %3231 = vtanh.f32 %v3779_v15 }
0x1294   :  { %v3230_v16 = vpop.eup %3229 }
0x1295   :  { %1842 = vrot.lane.b32.xlu0 %v3230_v16, %s3337_s25 }
0x1299   :  { %v3232_v17 = vpop.eup %3231 }
0x129a   :  { %1937 = vrot.lane.b32.xlu1 %v3232_v17, %s3337_s25  ;;  %v2386_v17 = vld [vmem:[#allocation5] sm:$0xff] }
0x1307   :  { %v1843_v53 = vpop.permute.xlu0 %1842 }
0x1308   :  { %v1845_v18 = vmul.f32 %v3226_v13, %v1843_v53  ;;  %v2388_v53 = vld [vmem:[#allocation5 + $0x10] sm:$0xff] }
0x130a   :  { %1942 = vrot.lane.b32.xlu0 %v1845_v18, %s3338_s26 }
0x130c   :  { %v1938_v19 = vpop.permute.xlu1 %1937 }
0x130d   :  { %v1940_v20 = vmul.f32 %v3228_v52, %v1938_v19  ;;  %v2389_v19 = vld [vmem:[#allocation5 + $0x18] sm:$0xff] }
0x130f   :  { %2017 = vrot.lane.b32.xlu1 %v1940_v20, %s3338_s26  ;;  %v3117_v20 = vpack.c.bf16 %v2389_v19, %v2388_v53 }
0x137c   :  { %v1943_v21 = vpop.permute.xlu0 %1942 }
0x137d   :  { %2908 = vmatmul.mubr.msk.f32.vlgmr.msra.gmra.mrb[20].mxu1 %vm219_vm2, %v1943_v21 }
0x137e   :  { %3097 = vmatpush3.bf16.msra.mxu1 %v3426_v8  ;;  %2929 = vmatprep.mubr.msk.f32.mxu1 %vm3335_vm0, %v3336_v1 }
0x137f   :  { %3098 = vmatprep.subr.bf16.mxu1 %v3334_v0 }
0x1381   :  { %v2018_v22 = vpop.permute.xlu1 %2017 }
0x1382   :  { %3100 = vmatpush3.bf16.msra.mxu1 %v3439_v12  ;;  %2919 = vmatmul.mubr.msk.f32.vlgmr.msra.gmra.mrb[26].mxu0 %vm219_vm2, %v2018_v22 }
0x1383   :  { %3107 = vmatprep.subr.bf16.mxu1 %v3334_v0  ;;  %3103 = vmatpush3.bf16.msra.mxu0 %v3482_v37 }
0x1384   :  { %3104 = vmatprep.subr.bf16.mxu0 %v3334_v0  ;;  %2940 = vmatprep.mubr.msk.f32.mxu0 %vm3335_vm0, %v3336_v1 }
0x1385   :  { %2930 = vmatmul.mubr.msk.f32.vlgmr.msra.gmra.mrb[22].mxu1 %vm219_vm2, %v2018_v22 }
0x1386   :  { %3109 = vmatpush3.bf16.msra.mxu1 %v3471_v33  ;;  %2951 = vmatprep.mubr.msk.f32.mxu1 %vm3335_vm0, %v3336_v1  ;;  %v3257_v33 = vld [vmem:[%s3850_s3] ss:$0 sm:$0xff] }
0x1387   :  { %3110 = vmatprep.subr.bf16.mxu1 %v3334_v0  ;;  %3106 = vmatpush3.bf16.msra.mxu0 %v3503_v43  ;;  %v205_v25 = vadd.f32 %v3257_v33, %v3545_v56 }
0x1388   :  { %3113 = vmatprep.subr.bf16.mxu0 %v3334_v0 }
0x138a   :  { %3112 = vmatpush3.bf16.msra.mxu1 %v3505_v44 }
0x1450   :  { %v2012_v8 = vpop.f32.mrb[20].mxu1 }
0x1451   :  { %v2909_v12 = vpop.f32.mrb[21].mxu1 }
0x1455   :  { %v2087_v37 = vpop.f32.mrb[26].mxu0 }
0x1456   :  { %v2088_v23 = vadd.f32 %v2087_v37, %v2012_v8  ;;  %v2920_v24 = vpop.f32.mrb[27].mxu0  ;;  %v2537_v37 = vld [vmem:[%s3855_s8] ss:$0 sm:$0xff] }
0x1458   :  { %v2091_v26 = vadd.f32 %v3568_v61, %v2088_v23  ;;  %v2182_v27 = vpop.f32.mrb[22].mxu1 }
0x1459   :  { %v2186_v28 = vadd.f32 %v2182_v27, %v205_v25  ;;  %v2931_v43 = vpop.f32.mrb[23].mxu1 }
0x145a   :  { %3233 = vtanh.f32 %v2091_v26  ;;  %v2531_v31 = vmul.f32 -1.442695, %v2091_v26 }
0x145b   :  { %3235 = vtanh.f32 %v2186_v28  ;;  %v2533_v32 = vmul.f32 -1.442695, %v2186_v28 }
0x145c   :  { %3237 = vpow2.f32 %v2531_v31 }
0x145d   :  { %3239 = vpow2.f32 %v2533_v32 }
0x1464   :  { %v3234_v30 = vpop.eup %3233 }
0x1465   :  { %v3236_v44 = vpop.eup %3235  ;;  %2101 = vrot.lane.b32.xlu0 %v3234_v30, %s3337_s25 }
0x1466   :  { %2196 = vrot.lane.b32.xlu1 %v3236_v44, %s3337_s25  ;;  %v3238_v34 = vpop.eup %3237 }
0x1467   :  { %v3240_v54 = vpop.eup %3239  ;;  %v2095_v56 = vadd.f32 1.0, %v3238_v34 }
0x1468   :  { %v2190_v35 = vadd.f32 1.0, %v3240_v54 }
0x1469   :  { %3241 = vrcp.f32 %v2095_v56 }
0x146a   :  { %3243 = vrcp.f32 %v2190_v35 }
0x1473   :  { %v3242_v29 = vpop.eup %3241 }
0x1474   :  { %v3244_v38 = vpop.eup %3243  ;;  %v2099_v42 = vmul.f32 %v3242_v29, %v3775_v10 }
0x1475   :  { %v2194_v51 = vmul.f32 %v3244_v38, %v3779_v15 }
0x14d7   :  { %v2102_v36 = vpop.permute.xlu0 %2101 }
0x14d8   :  { %v2197_v39 = vpop.permute.xlu1 %2196  ;;  %v2104_v40 = vmul.f32 %v3242_v29, %v2102_v36 }
0x14d9   :  { %v2199_v41 = vmul.f32 %v3244_v38, %v2197_v39 }
0x14da   :  { %2106 = vrot.lane.b32.xlu0 %v2104_v40, %s3338_s26 }
0x14db   :  { %2201 = vrot.lane.b32.xlu1 %v2199_v41, %s3338_s26 }
0x154c   :  { %v2107_v45 = vpop.permute.xlu0 %2106 }
0x154d   :  { %v2202_v46 = vpop.permute.xlu1 %2201  ;;  %v2109_v47 = vadd.f32 %v2107_v45, %v2099_v42 }
0x154e   :  { %v2204_v48 = vadd.f32 %v2202_v46, %v2194_v51 }
0x154f   :  { %3245 = vtanh.f32 %v2109_v47 }
0x1550   :  { %3247 = vtanh.f32 %v2204_v48 }
0x1559   :  { %v3246_v49 = vpop.eup %3245 }
0x155a   :  { %v3248_v50 = vpop.eup %3247  ;;  %2112 = vrot.lane.b32.xlu0 %v3246_v49, %s3337_s25 }
0x155b   :  { %2207 = vrot.lane.b32.xlu1 %v3248_v50, %s3337_s25 }
0x15cc   :  { %v2113_v55 = vpop.permute.xlu0 %2112 }
0x15cd   :  { %v2208_v57 = vpop.permute.xlu1 %2207  ;;  %v2115_v59 = vmul.f32 %v3242_v29, %v2113_v55 }
0x15ce   :  { %v2210_v60 = vmul.f32 %v3244_v38, %v2208_v57 }
0x15cf   :  { %2212 = vrot.lane.b32.xlu0 %v2115_v59, %s3338_s26 }
0x15d0   :  { %2287 = vrot.lane.b32.xlu1 %v2210_v60, %s3338_s26 }
0x1641   :  { %v2213_v62 = vpop.permute.xlu0 %2212 }
0x1642   :  { %v2288_v63 = vpop.permute.xlu1 %2287  ;;  %2941 = vmatmul.mubr.msk.f32.vlgmr.msra.gmra.mrb[28].mxu0 %vm219_vm2, %v2213_v62 }
0x1643   :  { %2952 = vmatmul.mubr.msk.f32.vlgmr.msra.gmra.mrb[24].mxu1 %vm219_vm2, %v2288_v63  ;;  %2962 = vmatprep.mubr.msk.f32.mxu0 %vm3335_vm0, %v3336_v1 }
0x1715   :  { %v2282_v2 = vpop.f32.mrb[28].mxu0 }
0x1716   :  { %v2357_v3 = vpop.f32.mrb[24].mxu1  ;;  %v2942_v13 = vpop.f32.mrb[29].mxu0 }
0x1717   :  { %v2358_v58 = vadd.f32 %v2357_v3, %v2282_v2  ;;  %v2953_v4 = vpop.f32.mrb[25].mxu1 }
0x1719   :  { %v2361_v52 = vadd.f32 %v3568_v61, %v2358_v58  ;;  %v2387_v61 = vld [vmem:[#allocation5 + $0x8] sm:$0xff] }
0x171a   :  { %v3114_v18 = vpack.c.bf16 %v2387_v61, %v2386_v17 }
0x171b   :  { %3249 = vtanh.f32 %v2361_v52  ;;  %v2536_v6 = vmul.f32 -1.442695, %v2361_v52 }
0x171c   :  { %3115 = vmatpush3.bf16.msra.mxu0 %v3114_v18 }
0x171d   :  { %3251 = vpow2.f32 %v2536_v6  ;;  %3116 = vmatprep.subr.bf16.mxu0 %v3334_v0 }
0x1720   :  { %3118 = vmatpush3.bf16.msra.mxu0 %v3117_v20 }
0x1725   :  { %v3250_v5 = vpop.eup %3249 }
0x1726   :  { %2371 = vrot.lane.b32.xlu0 %v3250_v5, %s3337_s25 }
0x1727   :  { %v3252_v7 = vpop.eup %3251 }
0x1728   :  { %v2365_v9 = vadd.f32 1.0, %v3252_v7 }
0x172a   :  { %3253 = vrcp.f32 %v2365_v9 }
0x1734   :  { %v3254_v10 = vpop.eup %3253 }
0x1735   :  { %v2369_v1 = vmul.f32 %v3254_v10, %v2109_v47 }
0x1798   :  { %v2372_v11 = vpop.permute.xlu0 %2371 }
0x1799   :  { %v2374_v14 = vmul.f32 %v3254_v10, %v2372_v11 }
0x179b   :  { %2376 = vrot.lane.b32.xlu1 %v2374_v14, %s3338_s26 }
0x180d   :  { %v2377_v15 = vpop.permute.xlu1 %2376 }
0x180e   :  { %v2379_v16 = vadd.f32 %v2377_v15, %v2369_v1 }
0x1810   :  { %3255 = vtanh.f32 %v2379_v16 }
0x181a   :  { %v3256_v21 = vpop.eup %3255 }
0x181b   :  { %2382 = vrot.lane.b32.xlu0 %v3256_v21, %s3337_s25 }
0x188d   :  { %v2383_v22 = vpop.permute.xlu0 %2382 }
0x188e   :  { %v2385_v8 = vmul.f32 %v3254_v10, %v2383_v22 }
0x1890   :  { %2398 = vrot.lane.b32.xlu1 %v2385_v8, %s3338_s26 }
0x1902   :  { %v2399_v12 = vpop.permute.xlu1 %2398 }
0x1903   :  { %2963 = vmatmul.mubr.msk.f32.vlgmr.msra.gmra.mrb[30].mxu0 %vm219_vm2, %v2399_v12 }
0x19d6   :  { %v2468_v23 = vpop.f32.mrb[30].mxu0 }
0x19d7   :  { %v2469_v24 = vadd.f32 %v2537_v37, %v2468_v23  ;;  %v2964_v0 = vpop.f32.mrb[31].mxu0 }
0x19d9   :  { %2472 = vst [vmem:[#allocation7] sm:$0xff] %v2469_v24 }
0x19da   :  { %3313 = shalt.err (!%p3310_p6)
}
0x19db   :  { %s3314_s7 = scalar_lea.hbm %s3856_s9, 128 }
0x19dc   :  { %p3315_p7 = scmp.ne.s32.totalorder %s3856_s9, %s3314_s7  ;;  %p3318_p8 = scmp.lt.u32.totalorder %s3314_s7, %s3856_s9 }
0x19de   :  { %p3320_p9 = pnand %p3318_p8, %p3315_p7 }
0x19e0   :  { %3323 = shalt.err (!%p3320_p9)
}
0x19e1   :  { %2482 = dma.vmem_to_hbm [thread:$0]  %s2480_s13, 128, %s3856_s9, [#allocation4]  }
0x19e2   :  { %3328 = dma.done.wait [#allocation4], 128  }
0x19e3   :  { %3329 = vsyncadd [#allocation4], 4294967168 }
0x19e4   :  { %2486 = vsyncpa [#allocation3], 1 }
0x19e5   :  { %2487 = vsyncpa [#allocation6], 1 }
0x19e6   :  { %2488 = vsyncpa [#allocation4], 1 }

</bundles_post_ra>
